<compile_context>
chip_gen: v5e
topology: v5e:2x2
jax: 0.10.0
libtpu: 0.0.40
codegen_flags: <defaults>
</compile_context>

<pallas_src>
import functools
import math

import jax
import jax.numpy as jnp
from jax.experimental import pallas as pl
from jax.experimental.pallas import tpu as pltpu

EXPANSION = 4
LANE = 128                      # TPU lane width; channel dims are padded to this once
_VMEM_LIMIT = 48 * 1024 * 1024  # safe on v5e/v6e (128 MiB) and v7x (64 MiB physical)


def _round_up(x, m):
    return ((x + m - 1) // m) * m


def _cdiv(a, b):
    return -(-a // b)


# ---------------------------------------------------------------------------
# Pallas kernels
# ---------------------------------------------------------------------------

def _mm_bn_kernel(a_ref, w_ref, b_ref, o_ref, *, do_relu):
    """One row-tile of out = [relu](A @ W_folded + shift). bf16 MXU, f32 epilogue."""
    y = jnp.dot(a_ref[...], w_ref[...], preferred_element_type=jnp.float32)
    y = y + b_ref[...]
    if do_relu:
        y = jnp.maximum(y, 0.0)
    o_ref[...] = y.astype(o_ref.dtype)


def _mm_bn_dual_kernel(a_ref, w_ref, b_ref, h_ref, s_ref):
    """conv1(1x1)+BN1+ReLU and shortcut(1x1)+BN fused in one wide MXU pass.

    W is [Cin_p, Cmid_p + Cout_p]: first column group -> conv1 branch (ReLU applied),
    second -> shortcut branch (no ReLU).  Both column groups are 128-aligned.
    """
    y = jnp.dot(a_ref[...], w_ref[...], preferred_element_type=jnp.float32)
    y = y + b_ref[...]
    c = h_ref.shape[-1]
    h_ref[...] = jnp.maximum(y[:, :c], 0.0).astype(h_ref.dtype)   # conv1 + BN1 + ReLU
    s_ref[...] = y[:, c:].astype(s_ref.dtype)                     # shortcut + BN (bf16)


def _tail_kernel(xph_ref, w2_ref, b2_ref, w3_ref, b3_ref, res_ref, o_ref,
                 *, stride, th, Wo, Hph_t):
    """Fused conv2(3x3,stride)+BN2+ReLU -> conv3(1x1)+BN3 -> +residual -> ReLU
    for one halo'd row tile of one image.

    xph_ref : [stride*stride * Hph_t, Wph, Cm] bf16  (phase-decomposed, zero-padded,
              halo'd h1 rows; phase ph occupies rows [ph*Hph_t, (ph+1)*Hph_t))
    w2_ref  : [9*Cm, Cm] bf16  (kh-major, kw-minor row blocks, BN2 scale folded)
    w3_ref  : [Cm, Co]   bf16  (BN3 scale folded)
    res_ref : [th, Wo, Co] bf16 (shortcut branch row tile)
    o_ref   : [th, Wo, Co]
    """
    Cm = w2_ref.shape[1]
    Co = w3_ref.shape[1]

    # Hoisted kw-shifts: one lane-concatenated [Hph_t, Wo, 3*Cm] view per row-phase
    # (1 for stride=1, 2 for stride=2), built once and reused across the kh loop.
    cats = []
    for rp in range(stride):
        parts = []
        for kw in range(3):
            ph = rp * stride + (kw % stride)
            ow = kw // stride
            base = ph * Hph_t
            parts.append(xph_ref[base:base + Hph_t, ow:ow + Wo, :])
        cats.append(jnp.concatenate(parts, axis=-1))          # [Hph_t, Wo, 3*Cm]

    # 3x3 conv as 3 matmuls with K = 3*Cm, accumulated in f32 (no HBM im2col).
    acc = jnp.zeros((th * Wo, Cm), jnp.float32)
    for kh in range(3):
        tap = cats[kh % stride][kh // stride:kh // stride + th]   # [th, Wo, 3*Cm]
        acc = acc + jnp.dot(tap.reshape(th * Wo, 3 * Cm),
                            w2_ref[kh * 3 * Cm:(kh + 1) * 3 * Cm, :],
                            preferred_element_type=jnp.float32)

    h2 = jnp.maximum(acc + b2_ref[...], 0.0).astype(jnp.bfloat16)       # BN2 + ReLU
    y = jnp.dot(h2, w3_ref[...], preferred_element_type=jnp.float32)    # conv3 (1x1)
    y = (y + b3_ref[...]).reshape(th, Wo, Co) + res_ref[...].astype(jnp.float32)
    o_ref[...] = jnp.maximum(y, 0.0).astype(o_ref.dtype)                # final ReLU


# ---------------------------------------------------------------------------
# pallas_call wrappers
# ---------------------------------------------------------------------------

def _row_tiling(M, tm_max=1024):
    """Row tiles: multiple of 16 (bf16 sublane packing), large (amortize ~0.35us/step),
    but always >= 2 grid steps when M is big enough (keeps both v7x TCs busy)."""
    n = max(_cdiv(M, tm_max), 2 if M >= 32 else 1)
    tm = _round_up(_cdiv(M, n), 16)
    return tm, _round_up(M, tm)


def matmul_bn(a, w, b, *, do_relu, out_dtype):
    """a: [M, K] bf16, w: [K, N] bf16 (BN scale folded), b: [1, N] f32."""
    M, K = a.shape
    Np = w.shape[1]
    tm, Mp = _row_tiling(M)
    if Mp != M:
        a = jnp.pad(a, ((0, Mp - M), (0, 0)))
    out = pl.pallas_call(
        functools.partial(_mm_bn_kernel, do_relu=do_relu),
        out_shape=jax.ShapeDtypeStruct((Mp, Np), out_dtype),
        grid=(Mp // tm,),
        in_specs=[
            pl.BlockSpec((tm, K), lambda i: (i, 0)),
            pl.BlockSpec((K, Np), lambda i: (0, 0)),   # weights stay resident
            pl.BlockSpec((1, Np), lambda i: (0, 0)),
        ],
        out_specs=pl.BlockSpec((tm, Np), lambda i: (i, 0)),
        compiler_params=pltpu.CompilerParams(
            dimension_semantics=("parallel",), vmem_limit_bytes=_VMEM_LIMIT),
    )(a, w, b)
    return out if Mp == M else out[:M]


def matmul_bn_dual(a, w, b, n1, n2):
    """Fused conv1 + shortcut matmul.  Returns (h1 [M, n1] bf16, sc [M, n2] bf16)."""
    M, K = a.shape
    tm, Mp = _row_tiling(M)
    if Mp != M:
        a = jnp.pad(a, ((0, Mp - M), (0, 0)))
    h, s = pl.pallas_call(
        _mm_bn_dual_kernel,
        out_shape=(jax.ShapeDtypeStruct((Mp, n1), jnp.bfloat16),
                   jax.ShapeDtypeStruct((Mp, n2), jnp.bfloat16)),
        grid=(Mp // tm,),
        in_specs=[
            pl.BlockSpec((tm, K), lambda i: (i, 0)),
            pl.BlockSpec((K, n1 + n2), lambda i: (0, 0)),
            pl.BlockSpec((1, n1 + n2), lambda i: (0, 0)),
        ],
        out_specs=(pl.BlockSpec((tm, n1), lambda i: (i, 0)),
                   pl.BlockSpec((tm, n2), lambda i: (i, 0))),
        compiler_params=pltpu.CompilerParams(
            dimension_semantics=("parallel",), vmem_limit_bytes=_VMEM_LIMIT),
    )(a, w, b)
    if Mp != M:
        h, s = h[:M], s[:M]
    return h, s


# ---------------------------------------------------------------------------
# XLA-side glue (cheap, ~1x the activation size -- no 9x im2col blowup)
# ---------------------------------------------------------------------------

def _conv3x3_phases(x, stride):
    """x: [N,H,W,C] -> ([N, stride*stride, Hph, Wph, C], Ho, Wo).

    Zero-pads spatially by 1 and splits into stride-phases so every 3x3 tap at the
    given stride becomes a plain (unstrided) slice inside the kernel."""
    assert stride in (1, 2), "phase decomposition validated for stride in {1, 2} only"
    N, H, W, C = x.shape
    xp = jnp.pad(x, ((0, 0), (1, 1), (1, 1), (0, 0)))
    Hp, Wp = H + 2, W + 2
    Ho = (Hp - 3) // stride + 1
    Wo = (Wp - 3) // stride + 1
    off = 2 // stride
    Hph, Wph = Ho + off, Wo + off
    phases = []
    for ph in range(stride):
        for pw in range(stride):
            sub = xp[:, ph::stride, pw::stride, :][:, :Hph, :Wph, :]
            pad_h, pad_w = Hph - sub.shape[1], Wph - sub.shape[2]
            if pad_h or pad_w:
                sub = jnp.pad(sub, ((0, 0), (0, pad_h), (0, pad_w), (0, 0)))
            phases.append(sub)
    return jnp.stack(phases, axis=1), Ho, Wo


def _pick_th(Ho, Wo_pad, target_rows=512):
    """H-tile rows: ~target_rows output pixels per step, >= 2 H-tiles when possible."""
    th = max(1, min(Ho, target_rows // max(Wo_pad, 1)))
    if Ho >= 2 and th >= Ho:
        th = _cdiv(Ho, 2)      # both v7x TensorCores get work even at N = 1
    return th


def bottleneck_tail_fused(h1, sc, prep, *, stride, out_dtype):
    """conv2(3x3)+BN2+ReLU + conv3(1x1)+BN3 + residual + ReLU, grid=(batch, H-tiles)."""
    N, _, _, Cm = h1.shape
    Co = sc.shape[-1]
    off = 2 // stride

    xph, Ho, Wo = _conv3x3_phases(h1, stride)              # [N, nph, Hph, Wph, Cm]
    Wo_pad = _round_up(Wo, 8)                               # relayout-free reshapes
    if Wo_pad != Wo:
        xph = jnp.pad(xph, ((0, 0), (0, 0), (0, 0), (0, Wo_pad - Wo), (0, 0)))
    Wph = Wo_pad + off

    th = _pick_th(Ho, Wo_pad)
    n_ht = _cdiv(Ho, th)
    Ho_pad = n_ht * th
    if Ho_pad + off > xph.shape[2]:
        xph = jnp.pad(xph, ((0, 0), (0, 0), (0, Ho_pad + off - xph.shape[2]),
                            (0, 0), (0, 0)))

    # Halo'd H-tiles: tile t needs phase rows [t*th, t*th + th + off).  The halo rows
    # are duplicated in HBM (off/th fraction -- negligible) so BlockSpec stays trivial.
    Hph_t = th + off
    nph = xph.shape[1]
    tiles = jnp.stack([xph[:, :, t * th:t * th + Hph_t] for t in range(n_ht)], axis=1)
    tiles = tiles.reshape(N, n_ht, nph * Hph_t, Wph, Cm)

    res = sc
    if (Ho_pad != Ho) or (Wo_pad != Wo):
        res = jnp.pad(sc, ((0, 0), (0, Ho_pad - Ho), (0, Wo_pad - Wo), (0, 0)))

    kernel = functools.partial(_tail_kernel, stride=stride, th=th, Wo=Wo_pad, Hph_t=Hph_t)
    out = pl.pallas_call(
        kernel,
        out_shape=jax.ShapeDtypeStruct((N, Ho_pad, Wo_pad, Co), out_dtype),
        grid=(N, n_ht),
        in_specs=[
            pl.BlockSpec((None, None, nph * Hph_t, Wph, Cm),
                         lambda n, t: (n, t, 0, 0, 0)),
            pl.BlockSpec((9 * Cm, Cm), lambda n, t: (0, 0)),   # weights stay resident
            pl.BlockSpec((1, Cm), lambda n, t: (0, 0)),
            pl.BlockSpec((Cm, Co), lambda n, t: (0, 0)),
            pl.BlockSpec((1, Co), lambda n, t: (0, 0)),
            pl.BlockSpec((None, th, Wo_pad, Co), lambda n, t: (n, t, 0, 0)),
        ],
        out_specs=pl.BlockSpec((None, th, Wo_pad, Co), lambda n, t: (n, t, 0, 0)),
        compiler_params=pltpu.CompilerParams(
            dimension_semantics=("parallel", "parallel"),
            vmem_limit_bytes=_VMEM_LIMIT),
    )(tiles, prep["w2"], prep["b2"], prep["w3"], prep["b3"], res)
    return out, Ho, Wo


# ---------------------------------------------------------------------------
# Parameters (deterministic synthetic, PyTorch layouts) + kernel-ready prep
# ---------------------------------------------------------------------------

def init_bottleneck_params(key, in_planes, planes, stride=1):
    out_planes = EXPANSION * planes
    ki = iter(jax.random.split(key, 20))

    def conv_w(cout, cin, k):
        fan = cin * k * k
        return jax.random.normal(next(ki), (cout, cin, k, k), jnp.float32) / math.sqrt(fan)

    def bn_p(c):
        return dict(
            gamma=1.0 + 0.1 * jax.random.normal(next(ki), (c,), jnp.float32),
            beta=0.1 * jax.random.normal(next(ki), (c,), jnp.float32),
            mean=0.1 * jax.random.normal(next(ki), (c,), jnp.float32),
            var=1.0 + 0.1 * jax.random.uniform(next(ki), (c,), jnp.float32),
        )

    raw = dict(conv1=conv_w(planes, in_planes, 1), bn1=bn_p(planes),
               conv2=conv_w(planes, planes, 3), bn2=bn_p(planes),
               conv3=conv_w(out_planes, planes, 1), bn3=bn_p(out_planes))
    has_sc = (stride != 1) or (in_planes != out_planes)
    if has_sc:
        raw["conv_sc"] = conv_w(out_planes, in_planes, 1)
        raw["bn_sc"] = bn_p(out_planes)
    else:
        assert in_planes == out_planes and stride == 1   # identity shortcut precondition
    cfg = dict(in_planes=in_planes, planes=planes, out_planes=out_planes,
               stride=stride, has_shortcut=has_sc)
    return cfg, raw


def _fold_bn(bn, eps=1e-5):
    scale = bn["gamma"] * jax.lax.rsqrt(bn["var"] + eps)
    shift = bn["beta"] - bn["mean"] * scale
    return scale, shift


def prepare_params(raw, cfg):
    """Fold BN scale into weights, lane-pad channel dims, cast weights to bf16."""
    cin, planes, cout = cfg["in_planes"], cfg["planes"], cfg["out_planes"]
    Ci, Cm, Co = _round_up(cin, LANE), _round_up(planes, LANE), _round_up(cout, LANE)

    def prep_1x1(w, bn, kp, np_):
        s, b = _fold_bn(bn)
        co_, ci_ = w.shape[0], w.shape[1]
        wm = w.reshape(co_, ci_).T * s[None, :]
        wm = jnp.pad(wm, ((0, kp - ci_), (0, np_ - co_))).astype(jnp.bfloat16)
        bm = jnp.pad(b, (0, np_ - co_)).reshape(1, np_).astype(jnp.float32)
        return wm, bm

    def prep_3x3(w, bn, kp, np_):
        s, b = _fold_bn(bn)
        co_, ci_ = w.shape[0], w.shape[1]
        wt = jnp.transpose(w, (2, 3, 1, 0)) * s[None, None, None, :]   # [3,3,ci,co]
        wt = jnp.pad(wt, ((0, 0), (0, 0), (0, kp - ci_), (0, np_ - co_)))
        wm = wt.reshape(9 * kp, np_).astype(jnp.bfloat16)   # kh-major, kw-minor blocks
        bm = jnp.pad(b, (0, np_ - co_)).reshape(1, np_).astype(jnp.float32)
        return wm, bm

    prep = {}
    prep["w1"], prep["b1"] = prep_1x1(raw["conv1"], raw["bn1"], Ci, Cm)
    prep["w2"], prep["b2"] = prep_3x3(raw["conv2"], raw["bn2"], Cm, Cm)
    prep["w3"], prep["b3"] = prep_1x1(raw["conv3"], raw["bn3"], Cm, Co)
    if cfg["has_shortcut"]:
        prep["wsc"], prep["bsc"] = prep_1x1(raw["conv_sc"], raw["bn_sc"], Ci, Co)
        if cfg["stride"] == 1:
            # Same input, same stride -> fuse shortcut into conv1's matmul (wider N).
            prep["w1sc"] = jnp.concatenate([prep["w1"], prep["wsc"]], axis=1)
            prep["b1sc"] = jnp.concatenate([prep["b1"], prep["bsc"]], axis=1)
    return prep


# ---------------------------------------------------------------------------
# Forward
# ---------------------------------------------------------------------------

def bottleneck_forward(x_nchw, prep, *, cfg, out_dtype=jnp.float32):
    """x_nchw: [N, in_planes, H, W] f32 (PyTorch layout) -> [N, 4*planes, Ho, Wo]."""
    stride = cfg["stride"]
    assert stride in (1, 2)
    cin, planes, cout = cfg["in_planes"], cfg["planes"], cfg["out_planes"]
    Ci, Cm, Co = _round_up(cin, LANE), _round_up(planes, LANE), _round_up(cout, LANE)

    # NCHW -> NHWC, lane-pad channels once, single bf16 cast pass over the input.
    x = jnp.transpose(x_nchw, (0, 2, 3, 1))
    N, H, W, _ = x.shape
    x_bf = jnp.pad(x, ((0, 0), (0, 0), (0, 0), (0, Ci - cin))).astype(jnp.bfloat16)
    x_flat = x_bf.reshape(N * H * W, Ci)

    if cfg["has_shortcut"] and stride == 1:
        # conv1+BN1+ReLU and shortcut-conv+BN in ONE wide MXU pass (dual output).
        h1_flat, sc_flat = matmul_bn_dual(x_flat, prep["w1sc"], prep["b1sc"], Cm, Co)
        h1 = h1_flat.reshape(N, H, W, Cm)
        sc = sc_flat.reshape(N, H, W, Co)                          # bf16 residual
    else:
        h1 = matmul_bn(x_flat, prep["w1"], prep["b1"], do_relu=True,
                       out_dtype=jnp.bfloat16).reshape(N, H, W, Cm)
        if cfg["has_shortcut"]:
            xs = x_bf[:, ::stride, ::stride, :]                    # bf16 strided input
            Hs, Ws = xs.shape[1], xs.shape[2]
            sc = matmul_bn(xs.reshape(N * Hs * Ws, Ci), prep["wsc"], prep["bsc"],
                           do_relu=False, out_dtype=jnp.bfloat16).reshape(N, Hs, Ws, Co)
        else:
            # Identity shortcut: valid only because in==out planes and padded lanes are 0.
            assert stride == 1 and Ci == Co and cin == cout
            sc = x_bf

    out, Ho, Wo = bottleneck_tail_fused(h1, sc, prep, stride=stride, out_dtype=out_dtype)
    out = out[:, :Ho, :Wo, :cout]            # drop spatial/lane padding once, at the end
    return jnp.transpose(out, (0, 3, 1, 2))  # NHWC -> NCHW


# ---------------------------------------------------------------------------
# Pure-XLA reference (same inference-mode BN folding and bf16/f32 precision path)
# ---------------------------------------------------------------------------

def bottleneck_reference(x_nchw, raw, cfg):
    stride = cfg["stride"]

    def conv(x_bf, w_f32, scale, s, pad):
        w = (w_f32 * scale[:, None, None, None]).astype(jnp.bfloat16)
        return jax.lax.conv_general_dilated(
            x_bf, w, (s, s), [(pad, pad), (pad, pad)],
            dimension_numbers=("NCHW", "OIHW", "NCHW"),
            preferred_element_type=jnp.float32)

    x_bf = x_nchw.astype(jnp.bfloat16)
    s1, b1 = _fold_bn(raw["bn1"]); s2, b2 = _fold_bn(raw["bn2"]); s3, b3 = _fold_bn(raw["bn3"])
    h1 = jnp.maximum(conv(x_bf, raw["conv1"], s1, 1, 0) + b1[None, :, None, None], 0.0)
    h2 = jnp.maximum(conv(h1.astype(jnp.bfloat16), raw["conv2"], s2, stride, 1)
                     + b2[None, :, None, None], 0.0)
    y = conv(h2.astype(jnp.bfloat16), raw["conv3"], s3, 1, 0) + b3[None, :, None, None]
    if cfg["has_shortcut"]:
        ss, bs = _fold_bn(raw["bn_sc"])
        sc = conv(x_bf, raw["conv_sc"], ss, stride, 0) + bs[None, :, None, None]
    else:
        sc = x_nchw.astype(jnp.float32)
    return jnp.maximum(y + sc, 0.0)


# ---------------------------------------------------------------------------
if __name__ == "__main__":
    key = jax.random.PRNGKey(0)
    k_x, k_p1, k_p2 = jax.random.split(key, 3)

    # Small Bottleneck: in_planes=16, planes=8 (out = 4*8 = 32), input 2x16x16x16 NCHW.
    x = jax.random.normal(k_x, (2, 16, 16, 16), jnp.float32)

    # --- stride=1 variant (fused conv1 + shortcut dual-output kernel) ---------
    cfg1, raw1 = init_bottleneck_params(k_p1, in_planes=16, planes=8, stride=1)
    prep1 = prepare_params(raw1, cfg1)
    fwd1 = jax.jit(functools.partial(bottleneck_forward, cfg=cfg1))
    out1 = jax.block_until_ready(fwd1(x, prep1))
    ref1 = jax.block_until_ready(bottleneck_reference(x, raw1, cfg1))
    assert out1.shape == (2, 32, 16, 16), out1.shape
    assert bool(jnp.all(jnp.isfinite(out1)))
    assert bool(jnp.all(out1 >= 0.0))
    assert bool(jnp.allclose(out1, ref1, atol=3e-2, rtol=3e-2))

    # --- stride=2 variant (phase-decomposed strided 3x3 + strided shortcut) ---
    cfg2, raw2 = init_bottleneck_params(k_p2, in_planes=16, planes=8, stride=2)
    prep2 = prepare_params(raw2, cfg2)
    fwd2 = jax.jit(functools.partial(bottleneck_forward, cfg=cfg2))
    out2 = jax.block_until_ready(fwd2(x, prep2))
    ref2 = jax.block_until_ready(bottleneck_reference(x, raw2, cfg2))
    assert out2.shape == (2, 32, 8, 8), out2.shape
    assert bool(jnp.all(jnp.isfinite(out2)))
    assert bool(jnp.all(out2 >= 0.0))
    assert bool(jnp.allclose(out2, ref2, atol=3e-2, rtol=3e-2))

    print("KERNEL_OK")
</pallas_src>

<mosaic_0001>
module attributes {stable_mosaic.version = 11 : i64} {
  func.func @_mm_bn_dual_kernel(%arg0: i32, %arg1: memref<256x128xbf16, #tpu.memory_space<vmem>>, %arg2: memref<128x256xbf16, #tpu.memory_space<vmem>>, %arg3: memref<1x256xf32, #tpu.memory_space<vmem>>, %arg4: memref<256x128xbf16, #tpu.memory_space<vmem>>, %arg5: memref<256x128xbf16, #tpu.memory_space<vmem>>) attributes {dimension_semantics = [#tpu.dimension_semantics<parallel>], iteration_bounds = array<i64: 2>, scalar_prefetch = 0 : i64, scratch_operands = 0 : i64, tpu.core_type = #tpu.core_type<tc>, window_params = [{transform_indices = @transform_0, window_bounds = array<i64: 256, 128>}, {pipeline_mode = #tpu.pipeline_mode<synchronous>, transform_indices = @transform_1, window_bounds = array<i64: 128, 256>}, {pipeline_mode = #tpu.pipeline_mode<synchronous>, transform_indices = @transform_2, window_bounds = array<i64: 1, 256>}, {transform_indices = @transform_3, window_bounds = array<i64: 256, 128>}, {transform_indices = @transform_4, window_bounds = array<i64: 256, 128>}]} {
    %c0 = arith.constant 0 : index
    %c0_0 = arith.constant 0 : index
    %0 = vector.load %arg1[%c0, %c0_0] : memref<256x128xbf16, #tpu.memory_space<vmem>>, vector<256x128xbf16>
    %c0_1 = arith.constant 0 : index
    %c0_2 = arith.constant 0 : index
    %1 = vector.load %arg2[%c0_1, %c0_2] : memref<128x256xbf16, #tpu.memory_space<vmem>>, vector<128x256xbf16>
    %cst = arith.constant dense<0.000000e+00> : vector<256x256xf32>
    %2 = tpu.matmul %0, %1, %cst {dimension_numbers = #tpu.dot_dimension_numbers<[1], [0], [0], [1], [0, 0, 1, 1], [], []>} : vector<256x128xbf16>, vector<128x256xbf16>, vector<256x256xf32> -> vector<256x256xf32>
    %c0_3 = arith.constant 0 : index
    %c0_4 = arith.constant 0 : index
    %3 = vector.load %arg3[%c0_3, %c0_4] : memref<1x256xf32, #tpu.memory_space<vmem>>, vector<1x256xf32>
    %4 = vector.broadcast %3 : vector<1x256xf32> to vector<256x256xf32>
    %5 = arith.addf %2, %4 : vector<256x256xf32>
    %6 = vector.extract_strided_slice %5 {offsets = [0, 0], sizes = [256, 128], strides = [1, 1]} : vector<256x256xf32> to vector<256x128xf32>
    %cst_5 = arith.constant 0.000000e+00 : f32
    %7 = vector.broadcast %cst_5 : f32 to vector<256x128xf32>
    %8 = arith.maximumf %6, %7 : vector<256x128xf32>
    %9 = arith.truncf %8 : vector<256x128xf32> to vector<256x128xbf16>
    %c0_6 = arith.constant 0 : index
    %c0_7 = arith.constant 0 : index
    %10 = vector.load %arg4[%c0_6, %c0_7] : memref<256x128xbf16, #tpu.memory_space<vmem>>, vector<256x128xbf16>
    tpu.vector_store %arg4[%c0_6, %c0_7], %9 {strides = array<i32>} : memref<256x128xbf16, #tpu.memory_space<vmem>>, vector<256x128xbf16>,
    %11 = vector.extract_strided_slice %5 {offsets = [0, 128], sizes = [256, 128], strides = [1, 1]} : vector<256x256xf32> to vector<256x128xf32>
    %12 = arith.truncf %11 : vector<256x128xf32> to vector<256x128xbf16>
    %c0_8 = arith.constant 0 : index
    %c0_9 = arith.constant 0 : index
    %13 = vector.load %arg5[%c0_8, %c0_9] : memref<256x128xbf16, #tpu.memory_space<vmem>>, vector<256x128xbf16>
    tpu.vector_store %arg5[%c0_8, %c0_9], %12 {strides = array<i32>} : memref<256x128xbf16, #tpu.memory_space<vmem>>, vector<256x128xbf16>,
    return
  }
  func.func @transform_0(%arg0: i32) -> (i32, i32) {
    %c0_i32 = arith.constant 0 : i32
    %c0_i32_0 = arith.constant 0 : i32
    return %arg0, %c0_i32 : i32, i32
  }
  func.func @transform_1(%arg0: i32) -> (i32, i32) {
    %c0_i32 = arith.constant 0 : i32
    %c0_i32_0 = arith.constant 0 : i32
    %c0_i32_1 = arith.constant 0 : i32
    return %c0_i32, %c0_i32_0 : i32, i32
  }
  func.func @transform_2(%arg0: i32) -> (i32, i32) {
    %c0_i32 = arith.constant 0 : i32
    %c0_i32_0 = arith.constant 0 : i32
    %c0_i32_1 = arith.constant 0 : i32
    return %c0_i32, %c0_i32_0 : i32, i32
  }
  func.func @transform_3(%arg0: i32) -> (i32, i32) {
    %c0_i32 = arith.constant 0 : i32
    %c0_i32_0 = arith.constant 0 : i32
    return %arg0, %c0_i32 : i32, i32
  }
  func.func @transform_4(%arg0: i32) -> (i32, i32) {
    %c0_i32 = arith.constant 0 : i32
    %c0_i32_0 = arith.constant 0 : i32
    return %arg0, %c0_i32 : i32, i32
  }
}

module attributes {stable_mosaic.version = 11 : i64} {
  func.func @_tail_kernel(%arg0: i32, %arg1: i32, %arg2: memref<1x1x10x18x128xbf16, #tpu.memory_space<vmem>>, %arg3: memref<1152x128xbf16, #tpu.memory_space<vmem>>, %arg4: memref<1x128xf32, #tpu.memory_space<vmem>>, %arg5: memref<128x128xbf16, #tpu.memory_space<vmem>>, %arg6: memref<1x128xf32, #tpu.memory_space<vmem>>, %arg7: memref<1x8x16x128xbf16, #tpu.memory_space<vmem>>, %arg8: memref<1x8x16x128xf32, #tpu.memory_space<vmem>>) attributes {dimension_semantics = [#tpu.dimension_semantics<parallel>, #tpu.dimension_semantics<parallel>], iteration_bounds = array<i64: 2, 2>, scalar_prefetch = 0 : i64, scratch_operands = 0 : i64, tpu.core_type = #tpu.core_type<tc>, window_params = [{transform_indices = @transform_0, window_bounds = array<i64: 1, 1, 10, 18, 128>}, {pipeline_mode = #tpu.pipeline_mode<synchronous>, transform_indices = @transform_1, window_bounds = array<i64: 1152, 128>}, {pipeline_mode = #tpu.pipeline_mode<synchronous>, transform_indices = @transform_2, window_bounds = array<i64: 1, 128>}, {pipeline_mode = #tpu.pipeline_mode<synchronous>, transform_indices = @transform_3, window_bounds = array<i64: 128, 128>}, {pipeline_mode = #tpu.pipeline_mode<synchronous>, transform_indices = @transform_4, window_bounds = array<i64: 1, 128>}, {transform_indices = @transform_5, window_bounds = array<i64: 1, 8, 16, 128>}, {transform_indices = @transform_6, window_bounds = array<i64: 1, 8, 16, 128>}]} {
    %c0 = arith.constant 0 : index
    %c0_0 = arith.constant 0 : index
    %c0_1 = arith.constant 0 : index
    %c0_2 = arith.constant 0 : index
    %c0_3 = arith.constant 0 : index
    %0 = vector.load %arg2[%c0, %c0_0, %c0_1, %c0_2, %c0_3] : memref<1x1x10x18x128xbf16, #tpu.memory_space<vmem>>, vector<1x1x10x16x128xbf16>
    %1 = vector.shape_cast %0 : vector<1x1x10x16x128xbf16> to vector<10x16x128xbf16>
    %c0_4 = arith.constant 0 : index
    %c0_5 = arith.constant 0 : index
    %c0_6 = arith.constant 0 : index
    %c1 = arith.constant 1 : index
    %c0_7 = arith.constant 0 : index
    %2 = vector.load %arg2[%c0_4, %c0_5, %c0_6, %c1, %c0_7] : memref<1x1x10x18x128xbf16, #tpu.memory_space<vmem>>, vector<1x1x10x16x128xbf16>
    %3 = vector.shape_cast %2 : vector<1x1x10x16x128xbf16> to vector<10x16x128xbf16>
    %c0_8 = arith.constant 0 : index
    %c0_9 = arith.constant 0 : index
    %c0_10 = arith.constant 0 : index
    %c2 = arith.constant 2 : index
    %c0_11 = arith.constant 0 : index
    %4 = vector.load %arg2[%c0_8, %c0_9, %c0_10, %c2, %c0_11] : memref<1x1x10x18x128xbf16, #tpu.memory_space<vmem>>, vector<1x1x10x16x128xbf16>
    %5 = vector.shape_cast %4 : vector<1x1x10x16x128xbf16> to vector<10x16x128xbf16>
    %6 = tpu.concatenate %1, %3, %5 in 2 : vector<10x16x128xbf16>, vector<10x16x128xbf16>, vector<10x16x128xbf16> -> vector<10x16x384xbf16>
    %cst = arith.constant 0.000000e+00 : f32
    %7 = vector.broadcast %cst : f32 to vector<128x128xf32>
    %8 = vector.extract_strided_slice %6 {offsets = [0, 0, 0], sizes = [8, 16, 384], strides = [1, 1, 1]} : vector<10x16x384xbf16> to vector<8x16x384xbf16>
    %9 = vector.shape_cast %8 : vector<8x16x384xbf16> to vector<128x384xbf16>
    %c0_12 = arith.constant 0 : index
    %c0_13 = arith.constant 0 : index
    %10 = vector.load %arg3[%c0_12, %c0_13] : memref<1152x128xbf16, #tpu.memory_space<vmem>>, vector<384x128xbf16>
    %cst_14 = arith.constant dense<0.000000e+00> : vector<128x128xf32>
    %11 = tpu.matmul %9, %10, %cst_14 {dimension_numbers = #tpu.dot_dimension_numbers<[1], [0], [0], [1], [0, 0, 1, 1], [], []>} : vector<128x384xbf16>, vector<384x128xbf16>, vector<128x128xf32> -> vector<128x128xf32>
    %12 = arith.addf %7, %11 : vector<128x128xf32>
    %13 = vector.extract_strided_slice %6 {offsets = [1, 0, 0], sizes = [8, 16, 384], strides = [1, 1, 1]} : vector<10x16x384xbf16> to vector<8x16x384xbf16>
    %14 = vector.shape_cast %13 : vector<8x16x384xbf16> to vector<128x384xbf16>
    %c384 = arith.constant 384 : index
    %c0_15 = arith.constant 0 : index
    %15 = vector.load %arg3[%c384, %c0_15] : memref<1152x128xbf16, #tpu.memory_space<vmem>>, vector<384x128xbf16>
    %cst_16 = arith.constant dense<0.000000e+00> : vector<128x128xf32>
    %16 = tpu.matmul %14, %15, %cst_16 {dimension_numbers = #tpu.dot_dimension_numbers<[1], [0], [0], [1], [0, 0, 1, 1], [], []>} : vector<128x384xbf16>, vector<384x128xbf16>, vector<128x128xf32> -> vector<128x128xf32>
    %17 = arith.addf %12, %16 : vector<128x128xf32>
    %18 = vector.extract_strided_slice %6 {offsets = [2, 0, 0], sizes = [8, 16, 384], strides = [1, 1, 1]} : vector<10x16x384xbf16> to vector<8x16x384xbf16>
    %19 = vector.shape_cast %18 : vector<8x16x384xbf16> to vector<128x384xbf16>
    %c768 = arith.constant 768 : index
    %c0_17 = arith.constant 0 : index
    %20 = vector.load %arg3[%c768, %c0_17] : memref<1152x128xbf16, #tpu.memory_space<vmem>>, vector<384x128xbf16>
    %cst_18 = arith.constant dense<0.000000e+00> : vector<128x128xf32>
    %21 = tpu.matmul %19, %20, %cst_18 {dimension_numbers = #tpu.dot_dimension_numbers<[1], [0], [0], [1], [0, 0, 1, 1], [], []>} : vector<128x384xbf16>, vector<384x128xbf16>, vector<128x128xf32> -> vector<128x128xf32>
    %22 = arith.addf %17, %21 : vector<128x128xf32>
    %c0_19 = arith.constant 0 : index
    %c0_20 = arith.constant 0 : index
    %23 = vector.load %arg4[%c0_19, %c0_20] : memref<1x128xf32, #tpu.memory_space<vmem>>, vector<1x128xf32>
    %24 = vector.broadcast %23 : vector<1x128xf32> to vector<128x128xf32>
    %25 = arith.addf %22, %24 : vector<128x128xf32>
    %cst_21 = arith.constant 0.000000e+00 : f32
    %26 = vector.broadcast %cst_21 : f32 to vector<128x128xf32>
    %27 = arith.maximumf %25, %26 : vector<128x128xf32>
    %28 = arith.truncf %27 : vector<128x128xf32> to vector<128x128xbf16>
    %c0_22 = arith.constant 0 : index
    %c0_23 = arith.constant 0 : index
    %29 = vector.load %arg5[%c0_22, %c0_23] : memref<128x128xbf16, #tpu.memory_space<vmem>>, vector<128x128xbf16>
    %cst_24 = arith.constant dense<0.000000e+00> : vector<128x128xf32>
    %30 = tpu.matmul %28, %29, %cst_24 {dimension_numbers = #tpu.dot_dimension_numbers<[1], [0], [0], [1], [0, 0, 1, 1], [], []>} : vector<128x128xbf16>, vector<128x128xbf16>, vector<128x128xf32> -> vector<128x128xf32>
    %c0_25 = arith.constant 0 : index
    %c0_26 = arith.constant 0 : index
    %31 = vector.load %arg6[%c0_25, %c0_26] : memref<1x128xf32, #tpu.memory_space<vmem>>, vector<1x128xf32>
    %32 = vector.broadcast %31 : vector<1x128xf32> to vector<128x128xf32>
    %33 = arith.addf %30, %32 : vector<128x128xf32>
    %34 = vector.shape_cast %33 : vector<128x128xf32> to vector<8x16x128xf32>
    %c0_27 = arith.constant 0 : index
    %c0_28 = arith.constant 0 : index
    %c0_29 = arith.constant 0 : index
    %c0_30 = arith.constant 0 : index
    %35 = vector.load %arg7[%c0_27, %c0_28, %c0_29, %c0_30] : memref<1x8x16x128xbf16, #tpu.memory_space<vmem>>, vector<1x8x16x128xbf16>
    %36 = vector.shape_cast %35 : vector<1x8x16x128xbf16> to vector<8x16x128xbf16>
    %37 = arith.extf %36 : vector<8x16x128xbf16> to vector<8x16x128xf32>
    %38 = arith.addf %34, %37 : vector<8x16x128xf32>
    %cst_31 = arith.constant 0.000000e+00 : f32
    %39 = vector.broadcast %cst_31 : f32 to vector<8x16x128xf32>
    %40 = arith.maximumf %38, %39 : vector<8x16x128xf32>
    %c0_32 = arith.constant 0 : index
    %c0_33 = arith.constant 0 : index
    %c0_34 = arith.constant 0 : index
    %c0_35 = arith.constant 0 : index
    %41 = vector.load %arg8[%c0_32, %c0_33, %c0_34, %c0_35] : memref<1x8x16x128xf32, #tpu.memory_space<vmem>>, vector<1x8x16x128xf32>
    %42 = vector.shape_cast %41 : vector<1x8x16x128xf32> to vector<8x16x128xf32>
    %43 = vector.shape_cast %40 : vector<8x16x128xf32> to vector<1x8x16x128xf32>
    tpu.vector_store %arg8[%c0_32, %c0_33, %c0_34, %c0_35], %43 {strides = array<i32>} : memref<1x8x16x128xf32, #tpu.memory_space<vmem>>, vector<1x8x16x128xf32>,
    return
  }
  func.func @transform_0(%arg0: i32, %arg1: i32) -> (i32, i32, i32, i32, i32) {
    %c0_i32 = arith.constant 0 : i32
    %c0_i32_0 = arith.constant 0 : i32
    %c0_i32_1 = arith.constant 0 : i32
    %c0_i32_2 = arith.constant 0 : i32
    return %arg0, %arg1, %c0_i32, %c0_i32_0, %c0_i32_1 : i32, i32, i32, i32, i32
  }
  func.func @transform_1(%arg0: i32, %arg1: i32) -> (i32, i32) {
    %c0_i32 = arith.constant 0 : i32
    %c0_i32_0 = arith.constant 0 : i32
    %c0_i32_1 = arith.constant 0 : i32
    return %c0_i32, %c0_i32_0 : i32, i32
  }
  func.func @transform_2(%arg0: i32, %arg1: i32) -> (i32, i32) {
    %c0_i32 = arith.constant 0 : i32
    %c0_i32_0 = arith.constant 0 : i32
    %c0_i32_1 = arith.constant 0 : i32
    return %c0_i32, %c0_i32_0 : i32, i32
  }
  func.func @transform_3(%arg0: i32, %arg1: i32) -> (i32, i32) {
    %c0_i32 = arith.constant 0 : i32
    %c0_i32_0 = arith.constant 0 : i32
    %c0_i32_1 = arith.constant 0 : i32
    return %c0_i32, %c0_i32_0 : i32, i32
  }
  func.func @transform_4(%arg0: i32, %arg1: i32) -> (i32, i32) {
    %c0_i32 = arith.constant 0 : i32
    %c0_i32_0 = arith.constant 0 : i32
    %c0_i32_1 = arith.constant 0 : i32
    return %c0_i32, %c0_i32_0 : i32, i32
  }
  func.func @transform_5(%arg0: i32, %arg1: i32) -> (i32, i32, i32, i32) {
    %c0_i32 = arith.constant 0 : i32
    %c0_i32_0 = arith.constant 0 : i32
    %c0_i32_1 = arith.constant 0 : i32
    return %arg0, %arg1, %c0_i32, %c0_i32_0 : i32, i32, i32, i32
  }
  func.func @transform_6(%arg0: i32, %arg1: i32) -> (i32, i32, i32, i32) {
    %c0_i32 = arith.constant 0 : i32
    %c0_i32_0 = arith.constant 0 : i32
    %c0_i32_1 = arith.constant 0 : i32
    return %arg0, %arg1, %c0_i32, %c0_i32_0 : i32, i32, i32, i32
  }
}

</mosaic_0001>

<bundles_post_ra>
// kernel: bottleneck_forward.2
= control target key start
LH: loop header
LB: loop body
LE: loop exit
PB: predicated region body
PF: predicated region fallthrough
CT: control target
= control target key end

     0   :  { %s1293_s15 = smov 0   ;;  %s1541_s0 = inlined_call_operand.vmem [shape: bf16[512,128], index: 0, kind: input, shape index: {}]   ;;  %s1542_s1 = inlined_call_operand.vmem [shape: bf16[128,256], index: 1, kind: input, shape index: {}]   ;;  %s1543_s2 = inlined_call_operand.vmem [shape: f32[1,256], index: 2, kind: input, shape index: {}]   ;;  %s1544_s3 = inlined_call_operand.vmem [shape: bf16[512,128], index: 3, kind: output, shape index: {0}]   ;;  %s1545_s4 = inlined_call_operand.vmem [shape: bf16[512,128], index: 4, kind: output, shape index: {1}]  }
   0x1 LB: > { %s873_s16 = sadd.s32 4294967295, %s1266_s15   ;;  %p877_p0 = scmp.ge.s32.totalorder %s1266_s15, 1  ;;  %s1266_s15 = sphi %s1293_s15, %s15_s15  }
   0x2   : > { %p166_p1 = scmp.lt.s32.totalorder %s1266_s15, 3 }
   0x4   : > { %p167_p2 = pnand %p877_p0, %p166_p1 }
   0x5   : > { %s878_s7 = sshll.u32 (!%p167_p2), %s873_s16, 5 }
   0x6   : > { %170 = sbr.rel (%p167_p2) target bundleno = 304 (0x130), region = 32  ;;  %p198_p3 = scmp.lt.s32.totalorder (!%p167_p2), %s878_s7, 63 }
   0xb   : > { %v1006_v0 = vld [vmem:[%s1542_s1 + $0x70] sm:$0xf]  ;;  %v1045_v1 = vld [vmem:[%s1542_s1 + $0x74] sm:$0xf0]  ;;  %v1044_v2 = vld [vmem:[%s1542_s1 + $0x74] sm:$0xf] }
   0xc   : > { %v1007_v3 = vor.u32 %v1045_v1, %v1006_v0  ;;  %v1008_v4 = vld [vmem:[%s1542_s1 + $0x78] sm:$0xf0]  ;;  %v998_v5 = vld [vmem:[%s1542_s1 + $0x60] sm:$0xf]  ;;  %v1043_v6 = vld [vmem:[%s1542_s1 + $0x64] sm:$0xf0] }
   0xd   : > { %v1011_v7 = vor.u32 %v1044_v2, %v1008_v4  ;;  %v1042_v8 = vld [vmem:[%s1542_s1 + $0x64] sm:$0xf]  ;;  %v1000_v9 = vld [vmem:[%s1542_s1 + $0x68] sm:$0xf0]  ;;  %v999_v10 = vor.u32 %v1043_v6, %v998_v5  ;;  %v990_v12 = vld [vmem:[%s1542_s1 + $0x50] sm:$0xf] }
   0xe   : > { %445 = vmatpush.bf16.msra.mxu0 %v1007_v3  ;;  %1236 = vmatpush.bf16.msra.mxu2 %v1007_v3  ;;  %v1003_v11 = vor.u32 %v1042_v8, %v1000_v9  ;;  %v1041_v13 = vld [vmem:[%s1542_s1 + $0x54] sm:$0xf0]  ;;  %v1040_v14 = vld [vmem:[%s1542_s1 + $0x54] sm:$0xf]  ;;  %v992_v15 = vld [vmem:[%s1542_s1 + $0x58] sm:$0xf0] }
   0xf   : > { %534 = vmatpush.bf16.msra.mxu1 %v1011_v7  ;;  %1244 = vmatpush.bf16.msra.mxu3 %v1011_v7  ;;  %v991_v16 = vor.u32 %v1041_v13, %v990_v12  ;;  %v995_v17 = vor.u32 %v1040_v14, %v992_v15  ;;  %v982_v18 = vld [vmem:[%s1542_s1 + $0x40] sm:$0xf]  ;;  %v1039_v19 = vld [vmem:[%s1542_s1 + $0x44] sm:$0xf0]  ;;  %v1038_v20 = vld [vmem:[%s1542_s1 + $0x44] sm:$0xf] }
  0x10   : > { %v984_v21 = vld [vmem:[%s1542_s1 + $0x48] sm:$0xf0]  ;;  %v983_v22 = vor.u32 %v1039_v19, %v982_v18  ;;  %v974_v24 = vld [vmem:[%s1542_s1 + $0x30] sm:$0xf]  ;;  %v1037_v25 = vld [vmem:[%s1542_s1 + $0x34] sm:$0xf0] }
  0x11   : > { %v987_v23 = vor.u32 %v1038_v20, %v984_v21  ;;  %v1036_v26 = vld [vmem:[%s1542_s1 + $0x34] sm:$0xf]  ;;  %v976_v27 = vld [vmem:[%s1542_s1 + $0x38] sm:$0xf0]  ;;  %v975_v28 = vor.u32 %v1037_v25, %v974_v24  ;;  %v966_v30 = vld [vmem:[%s1542_s1 + $0x20] sm:$0xf] }
  0x12   : > { %446 = vmatpush.bf16.msra.mxu0 %v999_v10  ;;  %1237 = vmatpush.bf16.msra.mxu2 %v999_v10  ;;  %v979_v29 = vor.u32 %v1036_v26, %v976_v27  ;;  %v1035_v31 = vld [vmem:[%s1542_s1 + $0x24] sm:$0xf0]  ;;  %v1034_v32 = vld [vmem:[%s1542_s1 + $0x24] sm:$0xf]  ;;  %v968_v33 = vld [vmem:[%s1542_s1 + $0x28] sm:$0xf0] }
  0x13   : > { %535 = vmatpush.bf16.msra.mxu1 %v1003_v11  ;;  %1245 = vmatpush.bf16.msra.mxu3 %v1003_v11  ;;  %v967_v34 = vor.u32 %v1035_v31, %v966_v30  ;;  %v971_v35 = vor.u32 %v1034_v32, %v968_v33  ;;  %v958_v36 = vld [vmem:[%s1542_s1 + $0x10] sm:$0xf]  ;;  %v1033_v37 = vld [vmem:[%s1542_s1 + $0x14] sm:$0xf0]  ;;  %s1547_s7 = smov (!%p198_p3, %s878_s7), 63 }
  0x14   : > { %v1032_v38 = vld [vmem:[%s1542_s1 + $0x14] sm:$0xf]  ;;  %v960_v39 = vld [vmem:[%s1542_s1 + $0x18] sm:$0xf0]  ;;  %v959_v40 = vor.u32 %v1033_v37, %v958_v36  ;;  %v950_v42 = vld [vmem:[%s1542_s1] sm:$0xf] }
  0x15   : > { %v963_v41 = vor.u32 %v1032_v38, %v960_v39  ;;  %v1031_v43 = vld [vmem:[%s1542_s1 + $0x4] sm:$0xf0]  ;;  %s1393_s29 = sshll.u32 %s1547_s7, 2  ;;  %v1030_v44 = vld [vmem:[%s1542_s1 + $0x4] sm:$0xf] }
  0x16   : > { %447 = vmatpush.bf16.msra.mxu0 %v991_v16  ;;  %1238 = vmatpush.bf16.msra.mxu2 %v991_v16  ;;  %v952_v45 = vld [vmem:[%s1542_s1 + $0x8] sm:$0xf0]  ;;  %v951_v46 = vor.u32 %v1031_v43, %v950_v42  ;;  %s1405_s11 = scalar_lea.vmem %s1541_s0, %s1393_s29  ;;  %v263_v0 = vld [vmem:[%s1543_s2] sm:$0x3]  ;;  %s1438_s14 = scalar_lea.vmem %s1545_s4, %s1393_s29 }
  0x17   : > { %536 = vmatpush.bf16.msra.mxu1 %v995_v17  ;;  %1246 = vmatpush.bf16.msra.mxu3 %v995_v17  ;;  %v955_v47 = vor.u32 %v1030_v44, %v952_v45  ;;  %v1014_v48 = vld [vmem:[%s1405_s11] sm:$0xff]  ;;  %v1015_v50 = vld [vmem:[%s1405_s11 + $0x8] sm:$0xff]  ;;  %v1016_v52 = vld [vmem:[%s1405_s11 + $0x10] sm:$0xff]  ;;  %v1426_v3 = vperm.slane %v263_v0, 0  ;;  %v1428_v4 = vperm.slane %v263_v0, 1  ;;  %s1444_s19 = scalar_lea.vmem %s1544_s3, %s1393_s29 }
  0x18   : > { %v1022_v49 = vld [vmem:[%s1405_s11 + $0x40] sm:$0xff]  ;;  %v1023_v51 = vld [vmem:[%s1405_s11 + $0x48] sm:$0xff]  ;;  %v1024_v53 = vld [vmem:[%s1405_s11 + $0x50] sm:$0xff] }
  0x19   : > { %v1017_v54 = vld [vmem:[%s1405_s11 + $0x18] sm:$0xff]  ;;  %v1018_v56 = vld [vmem:[%s1405_s11 + $0x20] sm:$0xff]  ;;  %v1019_v58 = vld [vmem:[%s1405_s11 + $0x28] sm:$0xff] }
  0x1a   : > { %448 = vmatpush.bf16.msra.mxu0 %v983_v22  ;;  %1239 = vmatpush.bf16.msra.mxu2 %v983_v22  ;;  %v1025_v55 = vld [vmem:[%s1405_s11 + $0x58] sm:$0xff]  ;;  %v1026_v57 = vld [vmem:[%s1405_s11 + $0x60] sm:$0xff]  ;;  %v1027_v59 = vld [vmem:[%s1405_s11 + $0x68] sm:$0xff] }
  0x1b   : > { %537 = vmatpush.bf16.msra.mxu1 %v987_v23  ;;  %1247 = vmatpush.bf16.msra.mxu3 %v987_v23  ;;  %v1020_v60 = vld [vmem:[%s1405_s11 + $0x30] sm:$0xff]  ;;  %v1021_v62 = vld [vmem:[%s1405_s11 + $0x38] sm:$0xff] }
  0x1c   : > { %v1028_v61 = vld [vmem:[%s1405_s11 + $0x70] sm:$0xff]  ;;  %v1029_v63 = vld [vmem:[%s1405_s11 + $0x78] sm:$0xff] }
  0x1e   : > { %449 = vmatpush.bf16.msra.mxu0 %v975_v28  ;;  %1240 = vmatpush.bf16.msra.mxu2 %v975_v28 }
  0x1f   : > { %538 = vmatpush.bf16.msra.mxu1 %v979_v29  ;;  %1248 = vmatpush.bf16.msra.mxu3 %v979_v29 }
  0x22   : > { %450 = vmatpush.bf16.msra.mxu0 %v967_v34  ;;  %1241 = vmatpush.bf16.msra.mxu2 %v967_v34 }
  0x23   : > { %539 = vmatpush.bf16.msra.mxu1 %v971_v35  ;;  %1249 = vmatpush.bf16.msra.mxu3 %v971_v35 }
  0x26   : > { %451 = vmatpush.bf16.msra.mxu0 %v959_v40  ;;  %1242 = vmatpush.bf16.msra.mxu2 %v959_v40 }
  0x27   : > { %540 = vmatpush.bf16.msra.mxu1 %v963_v41  ;;  %1250 = vmatpush.bf16.msra.mxu3 %v963_v41 }
  0x2a   : > { %452 = vmatpush.bf16.msra.mxu0 %v951_v46  ;;  %1243 = vmatpush.bf16.msra.mxu2 %v951_v46 }
  0x2b   : > { %541 = vmatpush.bf16.msra.mxu1 %v955_v47  ;;  %1251 = vmatpush.bf16.msra.mxu3 %v955_v47 }
  0x2d   : > { %453 = vmatmul.bf16.vlgmr.msra.gmra.mxu0 %v1014_v48  ;;  %493 = vmatmul.bf16.vlgmr.msra.gmra.mxu2 %v1022_v49 }
  0x2e   : > { %542 = vmatmul.bf16.vlgmr.msra.gmra.mxu1 %v1014_v48  ;;  %582 = vmatmul.bf16.vlgmr.msra.gmra.mxu3 %v1022_v49 }
  0x3d   : > { %458 = vmatmul.bf16.gmra.mxu0 %v1015_v50  ;;  %498 = vmatmul.bf16.gmra.mxu2 %v1023_v51 }
  0x3e   : > { %547 = vmatmul.bf16.gmra.mxu1 %v1015_v50  ;;  %587 = vmatmul.bf16.gmra.mxu3 %v1023_v51 }
  0x4d   : > { %463 = vmatmul.bf16.gmra.mxu0 %v1016_v52  ;;  %503 = vmatmul.bf16.gmra.mxu2 %v1024_v53 }
  0x4e   : > { %552 = vmatmul.bf16.gmra.mxu1 %v1016_v52  ;;  %592 = vmatmul.bf16.gmra.mxu3 %v1024_v53 }
  0x5d   : > { %468 = vmatmul.bf16.gmra.mxu0 %v1017_v54  ;;  %508 = vmatmul.bf16.gmra.mxu2 %v1025_v55 }
  0x5e   : > { %557 = vmatmul.bf16.gmra.mxu1 %v1017_v54  ;;  %597 = vmatmul.bf16.gmra.mxu3 %v1025_v55 }
  0x6d   : > { %473 = vmatmul.bf16.gmra.mxu0 %v1018_v56  ;;  %513 = vmatmul.bf16.gmra.mxu2 %v1026_v57 }
  0x6e   : > { %562 = vmatmul.bf16.gmra.mxu1 %v1018_v56  ;;  %602 = vmatmul.bf16.gmra.mxu3 %v1026_v57 }
  0x7d   : > { %478 = vmatmul.bf16.gmra.mxu0 %v1019_v58  ;;  %518 = vmatmul.bf16.gmra.mxu2 %v1027_v59 }
  0x7e   : > { %567 = vmatmul.bf16.gmra.mxu1 %v1019_v58  ;;  %607 = vmatmul.bf16.gmra.mxu3 %v1027_v59 }
  0x8d   : > { %483 = vmatmul.bf16.gmra.mxu0 %v1020_v60  ;;  %523 = vmatmul.bf16.gmra.mxu2 %v1028_v61 }
  0x8e   : > { %572 = vmatmul.bf16.gmra.mxu1 %v1020_v60  ;;  %612 = vmatmul.bf16.gmra.mxu3 %v1028_v61 }
  0x9d   : > { %488 = vmatmul.bf16.gmra.mxu0 %v1021_v62  ;;  %528 = vmatmul.bf16.gmra.mxu2 %v1029_v63 }
  0x9e   : > { %577 = vmatmul.bf16.gmra.mxu1 %v1021_v62  ;;  %617 = vmatmul.bf16.gmra.mxu3 %v1029_v63 }
  0xaa   : > { %v454_v1 = vpop.f32.mrf.mxu0 }
  0xab   : > { %v543_v2 = vpop.f32.mrf.mxu1  ;;  %v455_v6 = vadd.f32 %v454_v1, %v1426_v3 }
  0xac   : > { %v544_v8 = vadd.f32 %v543_v2, %v1428_v4 }
  0xad   : > { %v623_v13 = vmax.f32 %v455_v6, 0.0 }
  0xb0   : > { %v494_v5 = vpop.f32.mrf.mxu2 }
  0xb1   : > { %v583_v7 = vpop.f32.mrf.mxu3  ;;  %v495_v16 = vadd.f32 %v494_v5, %v1426_v3 }
  0xb2   : > { %v456_v9 = vpop.f32.mrf.mxu0  ;;  %v584_v21 = vadd.f32 %v583_v7, %v1428_v4 }
  0xb3   : > { %v457_v10 = vadd.f32 %v456_v9, %v1426_v3  ;;  %v545_v11 = vpop.f32.mrf.mxu1  ;;  %v639_v24 = vmax.f32 %v495_v16, 0.0 }
  0xb4   : > { %v546_v12 = vadd.f32 %v545_v11, %v1428_v4 }
  0xb5   : > { %v624_v14 = vmax.f32 %v457_v10, 0.0 }
  0xb6   : > { %v1129_v15 = vpack.c.bf16 %v546_v12, %v544_v8 }
  0xb7   : > { %v1049_v17 = vpack.c.bf16 %v624_v14, %v623_v13 }
  0xb8   : > { %1130 = vst [vmem:[%s1438_s14] sm:$0xff] %v1129_v15   ;;  %v496_v18 = vpop.f32.mrf.mxu2 }
  0xb9   : > { %1050 = vst [vmem:[%s1444_s19] sm:$0xff] %v1049_v17   ;;  %v497_v19 = vadd.f32 %v496_v18, %v1426_v3  ;;  %v585_v20 = vpop.f32.mrf.mxu3 }
  0xba   : > { %v586_v22 = vadd.f32 %v585_v20, %v1428_v4  ;;  %v459_v23 = vpop.f32.mrf.mxu0 }
  0xbb   : > { %v640_v25 = vmax.f32 %v497_v19, 0.0  ;;  %v548_v26 = vpop.f32.mrf.mxu1  ;;  %v460_v30 = vadd.f32 %v459_v23, %v1426_v3 }
  0xbc   : > { %v1169_v27 = vpack.c.bf16 %v586_v22, %v584_v21  ;;  %v549_v32 = vadd.f32 %v548_v26, %v1428_v4 }
  0xbd   : > { %v1089_v28 = vpack.c.bf16 %v640_v25, %v639_v24  ;;  %v625_v37 = vmax.f32 %v460_v30, 0.0 }
  0xbe   : > { %1228 = vst [vmem:[%s1438_s14 + $0x40] sm:$0xff] %v1169_v27  }
  0xbf   : > { %1213 = vst [vmem:[%s1444_s19 + $0x40] sm:$0xff] %v1089_v28  }
  0xc0   : > { %v499_v29 = vpop.f32.mrf.mxu2 }
  0xc1   : > { %v588_v31 = vpop.f32.mrf.mxu3  ;;  %v500_v40 = vadd.f32 %v499_v29, %v1426_v3 }
  0xc2   : > { %v461_v33 = vpop.f32.mrf.mxu0  ;;  %v589_v45 = vadd.f32 %v588_v31, %v1428_v4 }
  0xc3   : > { %v462_v34 = vadd.f32 %v461_v33, %v1426_v3  ;;  %v550_v35 = vpop.f32.mrf.mxu1  ;;  %v641_v48 = vmax.f32 %v500_v40, 0.0 }
  0xc4   : > { %v551_v36 = vadd.f32 %v550_v35, %v1428_v4 }
  0xc5   : > { %v626_v38 = vmax.f32 %v462_v34, 0.0 }
  0xc6   : > { %v1134_v39 = vpack.c.bf16 %v551_v36, %v549_v32 }
  0xc7   : > { %v1054_v41 = vpack.c.bf16 %v626_v38, %v625_v37 }
  0xc8   : > { %1221 = vst [vmem:[%s1438_s14 + $0x8] sm:$0xff] %v1134_v39   ;;  %v501_v42 = vpop.f32.mrf.mxu2 }
  0xc9   : > { %1206 = vst [vmem:[%s1444_s19 + $0x8] sm:$0xff] %v1054_v41   ;;  %v502_v43 = vadd.f32 %v501_v42, %v1426_v3  ;;  %v590_v44 = vpop.f32.mrf.mxu3 }
  0xca   : > { %v591_v46 = vadd.f32 %v590_v44, %v1428_v4  ;;  %v464_v47 = vpop.f32.mrf.mxu0 }
  0xcb   : > { %v642_v49 = vmax.f32 %v502_v43, 0.0  ;;  %v553_v50 = vpop.f32.mrf.mxu1  ;;  %v465_v54 = vadd.f32 %v464_v47, %v1426_v3 }
  0xcc   : > { %v1174_v51 = vpack.c.bf16 %v591_v46, %v589_v45  ;;  %v554_v56 = vadd.f32 %v553_v50, %v1428_v4 }
  0xcd   : > { %v1094_v52 = vpack.c.bf16 %v642_v49, %v641_v48  ;;  %v627_v61 = vmax.f32 %v465_v54, 0.0 }
  0xce   : > { %1229 = vst [vmem:[%s1438_s14 + $0x48] sm:$0xff] %v1174_v51  }
  0xcf   : > { %1214 = vst [vmem:[%s1444_s19 + $0x48] sm:$0xff] %v1094_v52  }
  0xd0   : > { %v504_v53 = vpop.f32.mrf.mxu2 }
  0xd1   : > { %v593_v55 = vpop.f32.mrf.mxu3  ;;  %v505_v0 = vadd.f32 %v504_v53, %v1426_v3 }
  0xd2   : > { %v466_v57 = vpop.f32.mrf.mxu0  ;;  %v594_v7 = vadd.f32 %v593_v55, %v1428_v4 }
  0xd3   : > { %v467_v58 = vadd.f32 %v466_v57, %v1426_v3  ;;  %v555_v59 = vpop.f32.mrf.mxu1  ;;  %v643_v10 = vmax.f32 %v505_v0, 0.0 }
  0xd4   : > { %v556_v60 = vadd.f32 %v555_v59, %v1428_v4 }
  0xd5   : > { %v628_v62 = vmax.f32 %v467_v58, 0.0 }
  0xd6   : > { %v1139_v63 = vpack.c.bf16 %v556_v60, %v554_v56 }
  0xd7   : > { %v1059_v1 = vpack.c.bf16 %v628_v62, %v627_v61 }
  0xd8   : > { %1222 = vst [vmem:[%s1438_s14 + $0x10] sm:$0xff] %v1139_v63   ;;  %v506_v2 = vpop.f32.mrf.mxu2 }
  0xd9   : > { %1207 = vst [vmem:[%s1444_s19 + $0x10] sm:$0xff] %v1059_v1   ;;  %v507_v5 = vadd.f32 %v506_v2, %v1426_v3  ;;  %v595_v6 = vpop.f32.mrf.mxu3 }
  0xda   : > { %v596_v8 = vadd.f32 %v595_v6, %v1428_v4  ;;  %v469_v9 = vpop.f32.mrf.mxu0 }
  0xdb   : > { %v644_v11 = vmax.f32 %v507_v5, 0.0  ;;  %v558_v12 = vpop.f32.mrf.mxu1  ;;  %v470_v16 = vadd.f32 %v469_v9, %v1426_v3 }
  0xdc   : > { %v1179_v13 = vpack.c.bf16 %v596_v8, %v594_v7  ;;  %v559_v18 = vadd.f32 %v558_v12, %v1428_v4 }
  0xdd   : > { %v1099_v14 = vpack.c.bf16 %v644_v11, %v643_v10  ;;  %v629_v23 = vmax.f32 %v470_v16, 0.0 }
  0xde   : > { %1230 = vst [vmem:[%s1438_s14 + $0x50] sm:$0xff] %v1179_v13  }
  0xdf   : > { %1215 = vst [vmem:[%s1444_s19 + $0x50] sm:$0xff] %v1099_v14  }
  0xe0   : > { %v509_v15 = vpop.f32.mrf.mxu2 }
  0xe1   : > { %v598_v17 = vpop.f32.mrf.mxu3  ;;  %v510_v26 = vadd.f32 %v509_v15, %v1426_v3 }
  0xe2   : > { %v471_v19 = vpop.f32.mrf.mxu0  ;;  %v599_v31 = vadd.f32 %v598_v17, %v1428_v4 }
  0xe3   : > { %v472_v20 = vadd.f32 %v471_v19, %v1426_v3  ;;  %v560_v21 = vpop.f32.mrf.mxu1  ;;  %v645_v34 = vmax.f32 %v510_v26, 0.0 }
  0xe4   : > { %v561_v22 = vadd.f32 %v560_v21, %v1428_v4 }
  0xe5   : > { %v630_v24 = vmax.f32 %v472_v20, 0.0 }
  0xe6   : > { %v1144_v25 = vpack.c.bf16 %v561_v22, %v559_v18 }
  0xe7   : > { %v1064_v27 = vpack.c.bf16 %v630_v24, %v629_v23 }
  0xe8   : > { %1223 = vst [vmem:[%s1438_s14 + $0x18] sm:$0xff] %v1144_v25   ;;  %v511_v28 = vpop.f32.mrf.mxu2 }
  0xe9   : > { %1208 = vst [vmem:[%s1444_s19 + $0x18] sm:$0xff] %v1064_v27   ;;  %v512_v29 = vadd.f32 %v511_v28, %v1426_v3  ;;  %v600_v30 = vpop.f32.mrf.mxu3 }
  0xea   : > { %v601_v32 = vadd.f32 %v600_v30, %v1428_v4  ;;  %v474_v33 = vpop.f32.mrf.mxu0 }
  0xeb   : > { %v646_v35 = vmax.f32 %v512_v29, 0.0  ;;  %v563_v36 = vpop.f32.mrf.mxu1  ;;  %v475_v40 = vadd.f32 %v474_v33, %v1426_v3 }
  0xec   : > { %v1184_v37 = vpack.c.bf16 %v601_v32, %v599_v31  ;;  %v564_v42 = vadd.f32 %v563_v36, %v1428_v4 }
  0xed   : > { %v1104_v38 = vpack.c.bf16 %v646_v35, %v645_v34  ;;  %v631_v47 = vmax.f32 %v475_v40, 0.0 }
  0xee   : > { %1231 = vst [vmem:[%s1438_s14 + $0x58] sm:$0xff] %v1184_v37  }
  0xef   : > { %1216 = vst [vmem:[%s1444_s19 + $0x58] sm:$0xff] %v1104_v38  }
  0xf0   : > { %v514_v39 = vpop.f32.mrf.mxu2 }
  0xf1   : > { %v603_v41 = vpop.f32.mrf.mxu3  ;;  %v515_v50 = vadd.f32 %v514_v39, %v1426_v3 }
  0xf2   : > { %v476_v43 = vpop.f32.mrf.mxu0  ;;  %v604_v55 = vadd.f32 %v603_v41, %v1428_v4 }
  0xf3   : > { %v477_v44 = vadd.f32 %v476_v43, %v1426_v3  ;;  %v565_v45 = vpop.f32.mrf.mxu1  ;;  %v647_v58 = vmax.f32 %v515_v50, 0.0 }
  0xf4   : > { %v566_v46 = vadd.f32 %v565_v45, %v1428_v4 }
  0xf5   : > { %v632_v48 = vmax.f32 %v477_v44, 0.0 }
  0xf6   : > { %v1149_v49 = vpack.c.bf16 %v566_v46, %v564_v42 }
  0xf7   : > { %v1069_v51 = vpack.c.bf16 %v632_v48, %v631_v47 }
  0xf8   : > { %1224 = vst [vmem:[%s1438_s14 + $0x20] sm:$0xff] %v1149_v49   ;;  %v516_v52 = vpop.f32.mrf.mxu2 }
  0xf9   : > { %1209 = vst [vmem:[%s1444_s19 + $0x20] sm:$0xff] %v1069_v51   ;;  %v517_v53 = vadd.f32 %v516_v52, %v1426_v3  ;;  %v605_v54 = vpop.f32.mrf.mxu3 }
  0xfa   : > { %v606_v56 = vadd.f32 %v605_v54, %v1428_v4  ;;  %v479_v57 = vpop.f32.mrf.mxu0 }
  0xfb   : > { %v648_v59 = vmax.f32 %v517_v53, 0.0  ;;  %v568_v60 = vpop.f32.mrf.mxu1  ;;  %v480_v0 = vadd.f32 %v479_v57, %v1426_v3 }
  0xfc   : > { %v1189_v61 = vpack.c.bf16 %v606_v56, %v604_v55  ;;  %v569_v2 = vadd.f32 %v568_v60, %v1428_v4 }
  0xfd   : > { %v1109_v62 = vpack.c.bf16 %v648_v59, %v647_v58  ;;  %v633_v9 = vmax.f32 %v480_v0, 0.0 }
  0xfe   : > { %1232 = vst [vmem:[%s1438_s14 + $0x60] sm:$0xff] %v1189_v61  }
  0xff   : > { %1217 = vst [vmem:[%s1444_s19 + $0x60] sm:$0xff] %v1109_v62  }
 0x100   : > { %v519_v63 = vpop.f32.mrf.mxu2 }
 0x101   : > { %v608_v1 = vpop.f32.mrf.mxu3  ;;  %v520_v12 = vadd.f32 %v519_v63, %v1426_v3 }
 0x102   : > { %v481_v5 = vpop.f32.mrf.mxu0  ;;  %v609_v17 = vadd.f32 %v608_v1, %v1428_v4 }
 0x103   : > { %v482_v6 = vadd.f32 %v481_v5, %v1426_v3  ;;  %v570_v7 = vpop.f32.mrf.mxu1  ;;  %v649_v20 = vmax.f32 %v520_v12, 0.0 }
 0x104   : > { %v571_v8 = vadd.f32 %v570_v7, %v1428_v4 }
 0x105   : > { %v634_v10 = vmax.f32 %v482_v6, 0.0 }
 0x106   : > { %v1154_v11 = vpack.c.bf16 %v571_v8, %v569_v2 }
 0x107   : > { %v1074_v13 = vpack.c.bf16 %v634_v10, %v633_v9 }
 0x108   : > { %1225 = vst [vmem:[%s1438_s14 + $0x28] sm:$0xff] %v1154_v11   ;;  %v521_v14 = vpop.f32.mrf.mxu2 }
 0x109   : > { %1210 = vst [vmem:[%s1444_s19 + $0x28] sm:$0xff] %v1074_v13   ;;  %v522_v15 = vadd.f32 %v521_v14, %v1426_v3  ;;  %v610_v16 = vpop.f32.mrf.mxu3 }
 0x10a   : > { %v611_v18 = vadd.f32 %v610_v16, %v1428_v4  ;;  %v484_v19 = vpop.f32.mrf.mxu0 }
 0x10b   : > { %v650_v21 = vmax.f32 %v522_v15, 0.0  ;;  %v573_v22 = vpop.f32.mrf.mxu1  ;;  %v485_v26 = vadd.f32 %v484_v19, %v1426_v3 }
 0x10c   : > { %v1194_v23 = vpack.c.bf16 %v611_v18, %v609_v17  ;;  %v574_v28 = vadd.f32 %v573_v22, %v1428_v4 }
 0x10d   : > { %v1114_v24 = vpack.c.bf16 %v650_v21, %v649_v20  ;;  %v635_v33 = vmax.f32 %v485_v26, 0.0 }
 0x10e   : > { %1233 = vst [vmem:[%s1438_s14 + $0x68] sm:$0xff] %v1194_v23  }
 0x10f   : > { %1218 = vst [vmem:[%s1444_s19 + $0x68] sm:$0xff] %v1114_v24  }
 0x110   : > { %v524_v25 = vpop.f32.mrf.mxu2 }
 0x111   : > { %v613_v27 = vpop.f32.mrf.mxu3  ;;  %v525_v36 = vadd.f32 %v524_v25, %v1426_v3 }
 0x112   : > { %v486_v29 = vpop.f32.mrf.mxu0  ;;  %v614_v41 = vadd.f32 %v613_v27, %v1428_v4 }
 0x113   : > { %v487_v30 = vadd.f32 %v486_v29, %v1426_v3  ;;  %v575_v31 = vpop.f32.mrf.mxu1  ;;  %v651_v44 = vmax.f32 %v525_v36, 0.0 }
 0x114   : > { %v576_v32 = vadd.f32 %v575_v31, %v1428_v4 }
 0x115   : > { %v636_v34 = vmax.f32 %v487_v30, 0.0 }
 0x116   : > { %v1159_v35 = vpack.c.bf16 %v576_v32, %v574_v28 }
 0x117   : > { %v1079_v37 = vpack.c.bf16 %v636_v34, %v635_v33 }
 0x118   : > { %1226 = vst [vmem:[%s1438_s14 + $0x30] sm:$0xff] %v1159_v35   ;;  %v526_v38 = vpop.f32.mrf.mxu2 }
 0x119   : > { %1211 = vst [vmem:[%s1444_s19 + $0x30] sm:$0xff] %v1079_v37   ;;  %v527_v39 = vadd.f32 %v526_v38, %v1426_v3  ;;  %v615_v40 = vpop.f32.mrf.mxu3 }
 0x11a   : > { %v616_v42 = vadd.f32 %v615_v40, %v1428_v4  ;;  %v489_v43 = vpop.f32.mrf.mxu0 }
 0x11b   : > { %v652_v45 = vmax.f32 %v527_v39, 0.0  ;;  %v578_v46 = vpop.f32.mrf.mxu1  ;;  %v490_v50 = vadd.f32 %v489_v43, %v1426_v3 }
 0x11c   : > { %v1199_v47 = vpack.c.bf16 %v616_v42, %v614_v41  ;;  %v579_v52 = vadd.f32 %v578_v46, %v1428_v4 }
 0x11d   : > { %v1119_v48 = vpack.c.bf16 %v652_v45, %v651_v44  ;;  %v637_v57 = vmax.f32 %v490_v50, 0.0 }
 0x11e   : > { %1234 = vst [vmem:[%s1438_s14 + $0x70] sm:$0xff] %v1199_v47  }
 0x11f   : > { %1219 = vst [vmem:[%s1444_s19 + $0x70] sm:$0xff] %v1119_v48  }
 0x120   : > { %v529_v49 = vpop.f32.mrf.mxu2 }
 0x121   : > { %v618_v51 = vpop.f32.mrf.mxu3  ;;  %v530_v60 = vadd.f32 %v529_v49, %v1426_v3 }
 0x122   : > { %v491_v53 = vpop.f32.mrf.mxu0  ;;  %v619_v1 = vadd.f32 %v618_v51, %v1428_v4 }
 0x123   : > { %v492_v54 = vadd.f32 %v491_v53, %v1426_v3  ;;  %v580_v55 = vpop.f32.mrf.mxu1  ;;  %v653_v5 = vmax.f32 %v530_v60, 0.0 }
 0x124   : > { %v581_v56 = vadd.f32 %v580_v55, %v1428_v4 }
 0x125   : > { %v638_v58 = vmax.f32 %v492_v54, 0.0 }
 0x126   : > { %v1164_v59 = vpack.c.bf16 %v581_v56, %v579_v52 }
 0x127   : > { %v1084_v61 = vpack.c.bf16 %v638_v58, %v637_v57 }
 0x128   : > { %1227 = vst [vmem:[%s1438_s14 + $0x38] sm:$0xff] %v1164_v59   ;;  %v531_v62 = vpop.f32.mrf.mxu2 }
 0x129   : > { %1212 = vst [vmem:[%s1444_s19 + $0x38] sm:$0xff] %v1084_v61   ;;  %v532_v63 = vadd.f32 %v531_v62, %v1426_v3  ;;  %v620_v0 = vpop.f32.mrf.mxu3 }
 0x12a   : > { %v621_v2 = vadd.f32 %v620_v0, %v1428_v4 }
 0x12b   : > { %v654_v6 = vmax.f32 %v532_v63, 0.0 }
 0x12c   : > { %v1204_v7 = vpack.c.bf16 %v621_v2, %v619_v1 }
 0x12d   : > { %v1124_v8 = vpack.c.bf16 %v654_v6, %v653_v5 }
 0x12e   : > { %1235 = vst [vmem:[%s1438_s14 + $0x78] sm:$0xff] %v1204_v7  }
 0x12f   : > { %1220 = vst [vmem:[%s1444_s19 + $0x78] sm:$0xff] %v1124_v8  }
 0x130 PF: > { %s15_s15 = sadd.s32 1, %s1266_s15  }
 0x131   : > { %p12_p4 = scmp.ge.s32.totalorder %s15_s15, 4  }
 0x133   :  { %14 = sbr.rel (!%p12_p4) target bundleno = 1 (0x1), region = 74 }

// kernel: bottleneck_forward.3
= control target key start
LH: loop header
LB: loop body
LE: loop exit
PB: predicated region body
PF: predicated region fallthrough
CT: control target
= control target key end

     0   :  { %s2700_s21 = smov 0   ;;  %s2702_s22 = smov 0   ;;  %s3414_s0 = inlined_call_operand.vmem [shape: bf16[2,2,10,18,128], index: 0, kind: input, shape index: {}]   ;;  %s3415_s1 = inlined_call_operand.vmem [shape: bf16[1152,128], index: 1, kind: input, shape index: {}]   ;;  %s3416_s2 = inlined_call_operand.vmem [shape: f32[1,128], index: 2, kind: input, shape index: {}]   ;;  %s3417_s3 = inlined_call_operand.vmem [shape: bf16[128,128], index: 3, kind: input, shape index: {}]   ;;  %s3418_s4 = inlined_call_operand.vmem [shape: f32[1,128], index: 4, kind: input, shape index: {}]   ;;  %s3419_s5 = inlined_call_operand.vmem [shape: bf16[2,16,16,128], index: 5, kind: input, shape index: {}]   ;;  %s3420_s6 = inlined_call_operand.vmem [shape: f32[2,16,16,128], index: 6, kind: output, shape index: {}]  }
   0x1   :  { %s2704_s23 = smov 0   ;;  %s2706_s24 = smov 0  }
   0x2   :  { %s2708_s25 = smov 0  }
   0x3 LB: > { %s25_s26 = sadd.s32 1, %s2655_s23  ;;  %s28_s27 = sadd.s32 1, %s2659_s24  ;;  %s2663_s25 = sphi %s2708_s25, %s16_s25   ;;  %s2659_s24 = sphi %s2706_s24, %s3424_s24   ;;  %s2655_s23 = sphi %s2704_s23, %s3423_s23   ;;  %s2651_s22 = sphi %s2702_s22, %s3422_s22   ;;  %s2647_s21 = sphi %s2700_s21, %s3421_s21  }
   0x4   : > { %p26_p0 = scmp.ge.s32.totalorder %s25_s26, 2  ;;  %p2060_p1 = scmp.ge.s32.totalorder %s2663_s25, 1 }
   0x5   : > { %p250_p2 = scmp.lt.s32.totalorder %s2663_s25, 5 }
   0x6   : > { %s3426_s26 = smov (%p26_p0, %s25_s26), 0  ;;  %s3428_s27 = smov (!%p26_p0, %s28_s27), %s2659_s24 }
   0x7   : > { %p251_p3 = pnand %p2060_p1, %p250_p2  ;;  %p30_p4 = scmp.ge.s32.totalorder %s3428_s27, 2 }
   0x8   : > { %p299_p5 = scmp.lt.s32.totalorder (!%p251_p3), %s2651_s22, 1  ;;  %p301_p6 = scmp.lt.s32.totalorder (!%p251_p3), %s2647_s21, 1 }
   0x9   : > { %s3430_s27 = smov (%p30_p4, %s3428_s27), 0  ;;  %254 = sbr.rel (%p251_p3) target bundleno = 646 (0x286), region = 44 }
   0xe   : > { %v2423_v0 = vld [vmem:[%s3415_s1 + $0xf8] sm:$0xff]  ;;  %v2422_v2 = vld [vmem:[%s3415_s1 + $0xf0] sm:$0xff]  ;;  %s3432_s22 = smov (!%p299_p5, %s2651_s22), 1  ;;  %v2421_v4 = vld [vmem:[%s3415_s1 + $0xe8] sm:$0xff]  ;;  %vm460_vm0 = vsmask.f32 7424 }
   0xf   : > { %v2431_v1 = vld [vmem:[%s3415_s1 + $0x138] sm:$0xff]  ;;  %902 = vmatpush.bf16.msra.mxu0 %v2423_v0  ;;  %2550 = vmatpush.bf16.msra.mxu2 %v2423_v0  ;;  %v2430_v3 = vld [vmem:[%s3415_s1 + $0x130] sm:$0xff]  ;;  %s302_s12 = scalar_select %p301_p6, %s2647_s21, 1  ;;  %v2429_v5 = vld [vmem:[%s3415_s1 + $0x128] sm:$0xff]  ;;  %vm621_vm1 = vcmask 1046528  }
  0x10   : > { %951 = vmatpush.bf16.msra.mxu1 %v2431_v1  ;;  %2558 = vmatpush.bf16.msra.mxu3 %v2431_v1  ;;  %s2567_s13 = smul.u32 60, %s3432_s22  ;;  %v2420_v6 = vld [vmem:[%s3415_s1 + $0xe0] sm:$0xff]  ;;  %v2419_v14 = vld [vmem:[%s3415_s1 + $0xd8] sm:$0xff]  ;;  %v2418_v18 = vld [vmem:[%s3415_s1 + $0xd0] sm:$0xff] }
  0x11   : > { %s2566_s14 = smul.u32 30, %s302_s12  ;;  %v2428_v11 = vld [vmem:[%s3415_s1 + $0x120] sm:$0xff]  ;;  %v2427_v15 = vld [vmem:[%s3415_s1 + $0x118] sm:$0xff]  ;;  %v2426_v19 = vld [vmem:[%s3415_s1 + $0x110] sm:$0xff]  ;;  %s2062_s12 = sshll.u32 %s2647_s21, 3 }
  0x12   : > { %v2417_v24 = vld [vmem:[%s3415_s1 + $0xc8] sm:$0xff]  ;;  %v2416_v32 = vld [vmem:[%s3415_s1 + $0xc0] sm:$0xff]  ;;  %v2439_v39 = vld [vmem:[%s3415_s1 + $0x178] sm:$0xff]  ;;  %p311_p7 = scmp.lt.s32.totalorder %s2062_s12, 15  ;;  %s2064_s21 = sshll.u32 %s3432_s22, 5 }
  0x13   : > { %903 = vmatpush.bf16.msra.mxu0 %v2422_v2  ;;  %2551 = vmatpush.bf16.msra.mxu2 %v2422_v2  ;;  %s305_s19 = sadd.s32 %s2567_s13, %s2566_s14  ;;  %v2425_v27 = vld [vmem:[%s3415_s1 + $0x108] sm:$0xff]  ;;  %v2424_v33 = vld [vmem:[%s3415_s1 + $0x100] sm:$0xff]  ;;  %v2399_v40 = vld [vmem:[%s3415_s1 + $0x38] sm:$0xff] }
  0x14   : > { %952 = vmatpush.bf16.msra.mxu1 %v2430_v3  ;;  %2559 = vmatpush.bf16.msra.mxu3 %v2430_v3  ;;  %s2061_s20 = sshll.u32 %s305_s19, 2  ;;  %v2407_v45 = vld [vmem:[%s3415_s1 + $0x78] sm:$0xff]  ;;  %v2438_v48 = vld [vmem:[%s3415_s1 + $0x170] sm:$0xff]  ;;  %v2437_v56 = vld [vmem:[%s3415_s1 + $0x168] sm:$0xff]  ;;  %s3434_s12 = smov (!%p311_p7, %s2062_s12), 15 }
  0x15   : > { %s2758_s30 = scalar_lea.vmem %s3414_s0, %s2061_s20  ;;  %v2398_v49 = vld [vmem:[%s3415_s1 + $0x30] sm:$0xff]  ;;  %v2397_v57 = vld [vmem:[%s3415_s1 + $0x28] sm:$0xff]  ;;  %v2415_v58 = vld [vmem:[%s3415_s1 + $0xb8] sm:$0xff]  ;;  %s2063_s13 = sshll.u32 %s3434_s12, 1 }
  0x16   : > { %v2764_v7 = vld [vmem:[%s2758_s30 + $0xc] sm:$0xff]   ;;  %v2770_v9 = vld [vmem:[%s2758_s30 + $0x3c] sm:$0xff]   ;;  %v351_v12 = vld [vmem:[%s2758_s30 + $0x14] sm:$0x1]  ;;  %s315_s14 = sadd.s32 %s2064_s21, %s2063_s13 }
  0x17   : > { %904 = vmatpush.bf16.msra.mxu0 %v2421_v4  ;;  %2552 = vmatpush.bf16.msra.mxu2 %v2421_v4  ;;  %v2767_v8 = vld [vmem:[%s2758_s30 + $0xc] sm:$0xf0]  ;;  %v2773_v10 = vld [vmem:[%s2758_s30 + $0x3c] sm:$0xf0]  ;;  %v355_v13 = vld [vmem:[%s2758_s30 + $0x44] sm:$0x1]  ;;  %v441_v16 = vunpack.c.l.b16 %v351_v12 }
  0x18   : > { %953 = vmatpush.bf16.msra.mxu1 %v2429_v5  ;;  %2560 = vmatpush.bf16.msra.mxu3 %v2429_v5  ;;  %v445_v17 = vunpack.c.l.b16 %v355_v13  ;;  %v476_v21 = vshll.u32 %v2764_v7, 16  ;;  %v524_v23 = vshll.u32 %v2770_v9, 16  ;;  %v474_v25 = vshrl.u32 %v2764_v7, 16  ;;  %v352_v38 = vld [vmem:[%s2758_s30 + $0x20] sm:$0x1]  ;;  %v2832_v46 = vld [vmem:[%s2758_s30 + $0x18] sm:$0xff]  }
  0x19   : > { %v2792_v20 = vpack.c.b16 %v441_v16, %v441_v16  ;;  %v522_v26 = vshrl.u32 %v2770_v9, 16  ;;  %v356_v41 = vld [vmem:[%s2758_s30 + $0x50] sm:$0x1]  ;;  %v442_v42 = vunpack.c.l.b16 %v352_v38  ;;  %v2841_v50 = vld [vmem:[%s2758_s30 + $0x48] sm:$0xff]   ;;  %v488_v52 = vshll.u32 %v2832_v46, 16  ;;  %v2436_v4 = vld [vmem:[%s3415_s1 + $0x160] sm:$0xff] }
  0x1a   : > { %v2795_v22 = vpack.c.b16 %v445_v17, %v445_v17  ;;  %v478_v28 = vrot.slane %v476_v21, 1  ;;  %v526_v30 = vrot.slane %v524_v23, 1  ;;  %v446_v47 = vunpack.c.l.b16 %v356_v41  ;;  %v2406_v55 = vld [vmem:[%s3415_s1 + $0x70] sm:$0xff]  ;;  %v2405_v1 = vld [vmem:[%s3415_s1 + $0x68] sm:$0xff]  ;;  %v2396_v5 = vld [vmem:[%s3415_s1 + $0x20] sm:$0xff]  ;;  %s2065_s15 = sshll.u32 %s315_s14, 2 }
  0x1b   : > { %905 = vmatpush.bf16.msra.mxu0 %v2420_v6  ;;  %2553 = vmatpush.bf16.msra.mxu2 %v2420_v6  ;;  %v481_v29 = vshll.u32 %v2792_v20, 16  ;;  %v2847_v51 = vpack.c.b16 %v442_v42, %v442_v42  ;;  %v536_v54 = vshll.u32 %v2841_v50, 16  ;;  %v486_v59 = vshrl.u32 %v2832_v46, 16  ;;  %v2873_v2 = vld [vmem:[%s2758_s30 + $0x24] sm:$0xff]   ;;  %v2885_v6 = vld [vmem:[%s2758_s30 + $0x54] sm:$0xff]   ;;  %s3347_s18 = scalar_lea.vmem %s3419_s5, %s2065_s15  ;;  %s2069_s22 = sshll.u32 %s315_s14, 3 }
  0x1c   : > { %954 = vmatpush.bf16.msra.mxu1 %v2428_v11  ;;  %2561 = vmatpush.bf16.msra.mxu3 %v2428_v11  ;;  %v529_v31 = vshll.u32 %v2795_v22, 16  ;;  %v479_v34 = vor.u32 %v478_v28, %v474_v25  ;;  %v527_v36 = vor.u32 %v526_v30, %v522_v26  ;;  %v2850_v53 = vpack.c.b16 %v446_v47, %v446_v47  ;;  %v2876_v3 = vld [vmem:[%s2758_s30 + $0x24] sm:$0xf0]  ;;  %v2888_v11 = vld [vmem:[%s2758_s30 + $0x54] sm:$0xf0]  ;;  %v2404_v17 = vld [vmem:[%s3415_s1 + $0x60] sm:$0xff]  ;;  %s3359_s7 = scalar_lea.vmem %s3420_s6, %s2069_s22 }
  0x1d   : > { %v483_v35 = vrot.slane %v481_v29, 1  ;;  %v490_v60 = vrot.slane %v488_v52, 1  ;;  %v493_v61 = vshll.u32 %v2847_v51, 16  ;;  %v534_v62 = vshrl.u32 %v2841_v50, 16  ;;  %v353_v16 = vld [vmem:[%s2758_s30 + $0x2c] sm:$0x1] }
  0x1e   : > { %v531_v37 = vrot.slane %v529_v31, 1  ;;  %v538_v63 = vrot.slane %v536_v54, 1  ;;  %v541_v0 = vshll.u32 %v2850_v53, 16  ;;  %v2395_v21 = vld [vmem:[%s3415_s1 + $0x18] sm:$0xff]  ;;  %v443_v25 = vunpack.c.l.b16 %v353_v16  ;;  %v2434_v28 = vld [vmem:[%s3415_s1 + $0x150] sm:$0xff]  ;;  %v2393_v38 = vld [vmem:[%s3415_s1 + $0x8] sm:$0xff] }
  0x1f   : > { %906 = vmatpush.bf16.msra.mxu0 %v2419_v14  ;;  %2554 = vmatpush.bf16.msra.mxu2 %v2419_v14  ;;  %v2823_v43 = vsel %vm460_vm0, %v479_v34, %v483_v35  ;;  %v491_v12 = vor.u32 %v490_v60, %v486_v59  ;;  %v495_v13 = vrot.slane %v493_v61, 1  ;;  %v2394_v29 = vld [vmem:[%s3415_s1 + $0x10] sm:$0xff]  ;;  %v500_v31 = vshll.u32 %v2873_v2, 16  ;;  %v2412_v52 = vld [vmem:[%s3415_s1 + $0xa0] sm:$0xff] }
  0x20   : > { %955 = vmatpush.bf16.msra.mxu1 %v2427_v15  ;;  %2562 = vmatpush.bf16.msra.mxu3 %v2427_v15  ;;  %v2826_v44 = vsel %vm460_vm0, %v527_v36, %v531_v37  ;;  %v539_v14 = vor.u32 %v538_v63, %v534_v62  ;;  %v543_v15 = vrot.slane %v541_v0, 1  ;;  %v2414_v30 = vld [vmem:[%s3415_s1 + $0xb0] sm:$0xff]  ;;  %v548_v34 = vshll.u32 %v2885_v6, 16  ;;  %v2413_v36 = vld [vmem:[%s3415_s1 + $0xa8] sm:$0xff]  ;;  %v2432_v54 = vld [vmem:[%s3415_s1 + $0x140] sm:$0xff] }
  0x21   : > { %v2902_v23 = vsel %vm460_vm0, %v491_v12, %v495_v13  ;;  %v2402_v35 = vld [vmem:[%s3415_s1 + $0x50] sm:$0xff]  ;;  %v2433_v37 = vld [vmem:[%s3415_s1 + $0x148] sm:$0xff]  ;;  %v502_v41 = vrot.slane %v500_v31, 1  ;;  %v2400_v63 = vld [vmem:[%s3415_s1 + $0x40] sm:$0xff] }
  0x22   : > { %v550_v47 = vrot.slane %v548_v34, 1  ;;  %v354_v0 = vld [vmem:[%s2758_s30 + $0x38] sm:$0x1]  ;;  %v2978_v12 = vld [vmem:[%s2758_s30 + $0x30] sm:$0xff]  }
  0x23   : > { %907 = vmatpush.bf16.msra.mxu0 %v2418_v18  ;;  %2555 = vmatpush.bf16.msra.mxu2 %v2418_v18  ;;  %v357_v18 = vld [vmem:[%s2758_s30 + $0x5c] sm:$0x1]  ;;  %v444_v13 = vunpack.c.l.b16 %v354_v0  ;;  %v2410_v16 = vld [vmem:[%s3415_s1 + $0x90] sm:$0xff] }
  0x24   : > { %956 = vmatpush.bf16.msra.mxu1 %v2426_v19  ;;  %2563 = vmatpush.bf16.msra.mxu3 %v2426_v19  ;;  %v2435_v19 = vld [vmem:[%s3415_s1 + $0x158] sm:$0xff]  ;;  %v447_v26 = vunpack.c.l.b16 %v357_v18 }
  0x25   : > { %v2447_v18 = vld [vmem:[%s3415_s1 + $0x1b8] sm:$0xff] }
  0x27   : > { %908 = vmatpush.bf16.msra.mxu0 %v2417_v24  ;;  %2556 = vmatpush.bf16.msra.mxu2 %v2417_v24  ;;  %v2905_v24 = vsel %vm460_vm0, %v539_v14, %v543_v15  ;;  %v2981_v15 = vld [vmem:[%s2758_s30 + $0x60] sm:$0xff]  }
  0x28   : > { %957 = vmatpush.bf16.msra.mxu1 %v2425_v27  ;;  %2564 = vmatpush.bf16.msra.mxu3 %v2425_v27  ;;  %v2403_v27 = vld [vmem:[%s3415_s1 + $0x58] sm:$0xff]  ;;  %v558_v34 = vshrl.u32 %v2981_v15, 16 }
  0x2b   : > { %909 = vmatpush.bf16.msra.mxu0 %v2416_v32  ;;  %2557 = vmatpush.bf16.msra.mxu2 %v2416_v32  ;;  %v2924_v32 = vpack.c.b16 %v443_v25, %v443_v25 }
  0x2c   : > { %958 = vmatpush.bf16.msra.mxu1 %v2424_v33  ;;  %2565 = vmatpush.bf16.msra.mxu3 %v2424_v33  ;;  %v2926_v33 = vpack.c.b16 %v447_v26, %v447_v26  ;;  %v560_v26 = vshll.u32 %v2981_v15, 16 }
  0x2d   : > { %v505_v42 = vshll.u32 %v2924_v32, 16  ;;  %v632_v0 = vrot.slane %v2924_v32, 1  ;;  %v2453_v32 = vld [vmem:[%s3415_s1 + $0x1e8] sm:$0xff] }
  0x2e   : > { %910 = vmatmul.bf16.vlgmr.msra.gmra.mxu0 %v2764_v7  ;;  %930 = vmatmul.bf16.vlgmr.msra.gmra.mxu2 %v2770_v9 }
  0x2f   : > { %1000 = vmatpush.bf16.msrb.mxu2 %v2439_v39  ;;  %959 = vmatmul.bf16.vlgmr.msra.gmra.mxu1 %v2823_v43  ;;  %v2611_v39 = vld [vmem:[%s2758_s30 + $0xc] sm:$0xe]  ;;  %v507_v60 = vrot.slane %v505_v42, 1  ;;  %v350_v42 = vld [vmem:[%s2758_s30 + $0x8] sm:$0x1] }
  0x30   : > { %1193 = vmatpush.bf16.msrb.mxu3 %v2399_v40  ;;  %1242 = vmatpush.bf16.msrb.mxu0 %v2407_v45  ;;  %v498_v40 = vshrl.u32 %v2873_v2, 16  ;;  %v546_v45 = vshrl.u32 %v2885_v6, 16 }
  0x31   : > { %979 = vmatmul.bf16.vlgmr.msra.gmra.mxu3 %v2826_v44  ;;  %1291 = vmatpush.bf16.msrb.mxu1 %v2415_v58 }
  0x32   : > { %v503_v59 = vor.u32 %v502_v41, %v498_v40  ;;  %v551_v61 = vor.u32 %v550_v47, %v546_v45  ;;  %v440_v45 = vunpack.c.l.b16 %v350_v42 }
  0x33   : > { %1001 = vmatpush.bf16.msrb.mxu2 %v2438_v48  ;;  %v553_v48 = vshll.u32 %v2926_v33, 16 }
  0x34   : > { %1194 = vmatpush.bf16.msrb.mxu3 %v2398_v49  ;;  %1243 = vmatpush.bf16.msrb.mxu0 %v2406_v55  ;;  %v2401_v49 = vld [vmem:[%s3415_s1 + $0x48] sm:$0xff]  ;;  %v2392_v55 = vld [vmem:[%s3415_s1] sm:$0xff] }
  0x35   : > { %1292 = vmatpush.bf16.msrb.mxu1 %v2414_v30  ;;  %v555_v62 = vrot.slane %v553_v48, 1 }
  0x37   : > { %1002 = vmatpush.bf16.msrb.mxu2 %v2437_v56  ;;  %v2612_v56 = vor.u32 %v2611_v39, %v2767_v8  ;;  %v2411_v8 = vld [vmem:[%s3415_s1 + $0x98] sm:$0xff] }
  0x38   : > { %1195 = vmatpush.bf16.msrb.mxu3 %v2397_v57  ;;  %1244 = vmatpush.bf16.msrb.mxu0 %v2405_v1  ;;  %v626_v57 = vrot.slane %v2792_v20, 1  ;;  %v358_v20 = vld [vmem:[%s2758_s30 + $0x68] sm:$0x1] }
  0x39   : > { %1293 = vmatpush.bf16.msrb.mxu1 %v2413_v36  ;;  %v625_v58 = vrot.slane %v2612_v56, 1  ;;  %v448_v14 = vunpack.c.l.b16 %v358_v20  ;;  %v2454_v56 = vld [vmem:[%s3415_s1 + $0x1f0] sm:$0xff] }
  0x3b   : > { %1003 = vmatpush.bf16.msrb.mxu2 %v2436_v4  ;;  %v2969_v1 = vsel %vm621_vm1, %v625_v58, %v626_v57  ;;  %v2972_v4 = vsel %vm460_vm0, %v503_v59, %v507_v60  ;;  %v2999_v25 = vpack.c.b16 %v448_v14, %v448_v14  ;;  %v2462_v57 = vld [vmem:[%s3415_s1 + $0x230] sm:$0xff]  ;;  %v2614_v58 = vld [vmem:[%s2758_s30 + $0x24] sm:$0xe]  ;;  %v2529_v60 = vld [vmem:[%s2758_s30] sm:$0xe] }
  0x3c   : > { %1196 = vmatpush.bf16.msrb.mxu3 %v2396_v5  ;;  %1245 = vmatpush.bf16.msrb.mxu0 %v2404_v17  ;;  %v2975_v5 = vsel %vm460_vm0, %v551_v61, %v555_v62  ;;  %v512_v17 = vshll.u32 %v2978_v12, 16  ;;  %v2528_v59 = vld [vmem:[%s2758_s30] sm:$0xf0] }
  0x3d   : > { %1294 = vmatpush.bf16.msrb.mxu1 %v2412_v52  ;;  %v565_v36 = vshll.u32 %v2999_v25, 16  ;;  %v2530_v20 = vor.u32 %v2529_v60, %v2528_v59 }
  0x3e   : > { %915 = vmatmul.bf16.gmra.mxu0 %v2832_v46  ;;  %935 = vmatmul.bf16.gmra.mxu2 %v2841_v50  ;;  %v514_v30 = vrot.slane %v512_v17, 1 }
  0x3f   : > { %1004 = vmatpush.bf16.msrb.mxu2 %v2435_v19  ;;  %964 = vmatmul.bf16.gmra.mxu1 %v2902_v23  ;;  %v2455_v19 = vld [vmem:[%s3415_s1 + $0x1f8] sm:$0xff]  ;;  %v567_v41 = vrot.slane %v565_v36, 1 }
  0x40   : > { %1197 = vmatpush.bf16.msrb.mxu3 %v2395_v21  ;;  %1246 = vmatpush.bf16.msrb.mxu0 %v2403_v27  ;;  %v2997_v21 = vpack.c.b16 %v444_v13, %v444_v13  ;;  %v2409_v27 = vld [vmem:[%s3415_s1 + $0x88] sm:$0xff] }
  0x41   : > { %984 = vmatmul.bf16.gmra.mxu3 %v2905_v24  ;;  %1295 = vmatpush.bf16.msrb.mxu1 %v2411_v8  ;;  %v2615_v8 = vor.u32 %v2614_v58, %v2876_v3  ;;  %v2445_v3 = vld [vmem:[%s3415_s1 + $0x1a8] sm:$0xff]  ;;  %v638_v58 = vrot.slane %v2795_v22, 1 }
  0x42   : > { %v517_v31 = vshll.u32 %v2997_v21, 16  ;;  %v2449_v22 = vld [vmem:[%s3415_s1 + $0x1c8] sm:$0xff] }
  0x43   : > { %1005 = vmatpush.bf16.msrb.mxu2 %v2434_v28  ;;  %v2463_v28 = vld [vmem:[%s3415_s1 + $0x238] sm:$0xff]  ;;  %v631_v13 = vrot.slane %v2615_v8, 1  ;;  %v2538_v8 = vld [vmem:[%s2758_s30 + $0x48] sm:$0xe] }
  0x44   : > { %1198 = vmatpush.bf16.msrb.mxu3 %v2394_v29  ;;  %1247 = vmatpush.bf16.msrb.mxu0 %v2402_v35  ;;  %v510_v29 = vshrl.u32 %v2978_v12, 16  ;;  %v562_v35 = vrot.slane %v560_v26, 1  ;;  %v519_v39 = vrot.slane %v517_v31, 1 }
  0x45   : > { %1296 = vmatpush.bf16.msrb.mxu1 %v2410_v16  ;;  %v3042_v17 = vsel %vm621_vm1, %v631_v13, %v632_v0 }
  0x46   : > { %v563_v40 = vor.u32 %v562_v35, %v558_v34  ;;  %v629_v35 = vrot.slane %v2847_v51, 1  ;;  %v2452_v51 = vld [vmem:[%s3415_s1 + $0x1e0] sm:$0xff] }
  0x47   : > { %1006 = vmatpush.bf16.msrb.mxu2 %v2433_v37  ;;  %v2408_v37 = vld [vmem:[%s3415_s1 + $0x80] sm:$0xff] }
  0x48   : > { %1199 = vmatpush.bf16.msrb.mxu3 %v2393_v38  ;;  %1248 = vmatpush.bf16.msrb.mxu0 %v2401_v49  ;;  %v515_v38 = vor.u32 %v514_v30, %v510_v29  ;;  %v3020_v48 = vsel %vm460_vm0, %v563_v40, %v567_v41  ;;  %v2473_v49 = vld [vmem:[%s2758_s30] sm:$0xff]   ;;  %v2531_v29 = vld [vmem:[%s2758_s30 + $0x18] sm:$0xf0]  ;;  %v2532_v30 = vld [vmem:[%s2758_s30 + $0x18] sm:$0xe] }
  0x49   : > { %1297 = vmatpush.bf16.msrb.mxu1 %v2409_v27  ;;  %v464_v52 = vshll.u32 %v2473_v49, 16  ;;  %v462_v61 = vshrl.u32 %v2473_v49, 16  ;;  %v2533_v31 = vor.u32 %v2532_v30, %v2531_v29  ;;  %v2459_v41 = vld [vmem:[%s3415_s1 + $0x218] sm:$0xff] }
  0x4a   : > { %v3017_v47 = vsel %vm460_vm0, %v515_v38, %v519_v39  ;;  %v2460_v38 = vld [vmem:[%s3415_s1 + $0x220] sm:$0xff]  ;;  %v2535_v39 = vld [vmem:[%s2758_s30 + $0x30] sm:$0xe] }
  0x4b   : > { %1007 = vmatpush.bf16.msrb.mxu2 %v2432_v54  ;;  %v450_v54 = vpack.c.b16 %v440_v45, %v440_v45  ;;  %v466_v62 = vrot.slane %v464_v52, 1  ;;  %v628_v34 = vrot.slane %v2533_v31, 1  ;;  %v635_v45 = vrot.slane %v2997_v21, 1  ;;  %v2617_v52 = vld [vmem:[%s2758_s30 + $0x3c] sm:$0xe]  ;;  %v2450_v21 = vld [vmem:[%s3415_s1 + $0x1d0] sm:$0xff] }
  0x4c   : > { %1200 = vmatpush.bf16.msrb.mxu3 %v2392_v55  ;;  %1249 = vmatpush.bf16.msrb.mxu0 %v2400_v63  ;;  %v2446_v55 = vld [vmem:[%s3415_s1 + $0x1b0] sm:$0xff] }
  0x4d   : > { %1298 = vmatpush.bf16.msrb.mxu1 %v2408_v37  ;;  %v469_v63 = vshll.u32 %v450_v54, 16  ;;  %v467_v14 = vor.u32 %v466_v62, %v462_v61  ;;  %v3060_v36 = vsel %vm621_vm1, %v628_v34, %v629_v35  ;;  %v2444_v37 = vld [vmem:[%s3415_s1 + $0x1a0] sm:$0xff]  ;;  %v2620_v34 = vld [vmem:[%s2758_s30 + $0x54] sm:$0xe] }
  0x4e   : > { %920 = vmatmul.bf16.gmra.mxu0 %v2873_v2  ;;  %940 = vmatmul.bf16.gmra.mxu2 %v2885_v6 }
  0x4f   : > { %969 = vmatmul.bf16.gmra.mxu1 %v2972_v4  ;;  %1532 = vmatpush.bf16.msra.mxu2 %v2447_v18  ;;  %v471_v16 = vrot.slane %v469_v63, 1  ;;  %v622_v18 = vrot.slane %v2530_v20, 1  ;;  %v2537_v63 = vld [vmem:[%s2758_s30 + $0x48] sm:$0xf0] }
  0x50   : > { %1581 = vmatpush.bf16.msra.mxu3 %v2455_v19  ;;  %1630 = vmatpush.bf16.msra.mxu0 %v2463_v28  ;;  %v623_v19 = vrot.slane %v450_v54, 1  ;;  %v2461_v28 = vld [vmem:[%s3415_s1 + $0x228] sm:$0xff]  ;;  %v2442_v54 = vld [vmem:[%s3415_s1 + $0x190] sm:$0xff] }
  0x51   : > { %989 = vmatmul.bf16.gmra.mxu3 %v2975_v5  ;;  %v472_v26 = vsel %vm460_vm0, %v467_v14, %v471_v16  ;;  %v2539_v16 = vor.u32 %v2538_v8, %v2537_v63 }
  0x52   : > { %v624_v27 = vsel %vm621_vm1, %v622_v18, %v623_v19  ;;  %v2457_v19 = vld [vmem:[%s3415_s1 + $0x208] sm:$0xff] }
  0x53   : > { %1533 = vmatpush.bf16.msra.mxu2 %v2446_v55  ;;  %v2618_v55 = vor.u32 %v2617_v52, %v2773_v10  ;;  %v2441_v10 = vld [vmem:[%s3415_s1 + $0x188] sm:$0xff] }
  0x54   : > { %1582 = vmatpush.bf16.msra.mxu3 %v2454_v56  ;;  %1631 = vmatpush.bf16.msra.mxu0 %v2462_v57  ;;  %v2458_v56 = vld [vmem:[%s3415_s1 + $0x210] sm:$0xff] }
  0x55   : > { %v637_v57 = vrot.slane %v2618_v55, 1 }
  0x57   : > { %1534 = vmatpush.bf16.msra.mxu2 %v2445_v3  ;;  %v3111_v60 = vsel %vm621_vm1, %v637_v57, %v638_v58  ;;  %v2541_v57 = vld [vmem:[%s2758_s30 + $0x60] sm:$0xe] }
  0x58   : > { %1583 = vmatpush.bf16.msra.mxu3 %v2453_v32  ;;  %1632 = vmatpush.bf16.msra.mxu0 %v2461_v28 }
  0x5b   : > { %1535 = vmatpush.bf16.msra.mxu2 %v2444_v37  ;;  %v2448_v37 = vld [vmem:[%s3415_s1 + $0x1c0] sm:$0xff] }
  0x5c   : > { %1584 = vmatpush.bf16.msra.mxu3 %v2452_v51  ;;  %1633 = vmatpush.bf16.msra.mxu0 %v2460_v38 }
  0x5e   : > { %925 = vmatmul.bf16.gmra.mxu0 %v2978_v12  ;;  %945 = vmatmul.bf16.gmra.mxu2 %v2981_v15 }
  0x5f   : > { %974 = vmatmul.bf16.gmra.mxu1 %v3017_v47 }
  0x60   : > { %1634 = vmatpush.bf16.msra.mxu0 %v2459_v41 }
  0x61   : > { %994 = vmatmul.bf16.gmra.mxu3 %v3020_v48 }
  0x64   : > { %1635 = vmatpush.bf16.msra.mxu0 %v2458_v56 }
  0x68   : > { %1636 = vmatpush.bf16.msra.mxu0 %v2457_v19 }
  0x6e   : > { %1008 = vmatmul.bf16.vlgmr.msrb.gmra.mxu2 %v2969_v1  ;;  %1250 = vmatmul.bf16.vlgmr.msrb.gmra.mxu0 %v472_v26  ;;  %v640_v26 = vrot.slane %v2539_v16, 1 }
  0x6f   : > { %1299 = vmatmul.bf16.vlgmr.msrb.gmra.mxu1 %v624_v27  ;;  %v641_v27 = vrot.slane %v2850_v53, 1  ;;  %v2440_v53 = vld [vmem:[%s3415_s1 + $0x180] sm:$0xff] }
  0x71   : > { %1201 = vmatmul.bf16.vlgmr.msrb.gmra.mxu3 %v2473_v49  ;;  %v3140_v30 = vsel %vm621_vm1, %v640_v26, %v641_v27 }
  0x7e   : > { %1013 = vmatmul.bf16.gmra.mxu2 %v3060_v36  ;;  %1255 = vmatmul.bf16.gmra.mxu0 %v2823_v43  ;;  %v2451_v43 = vld [vmem:[%s3415_s1 + $0x1d8] sm:$0xff] }
  0x7f   : > { %1304 = vmatmul.bf16.gmra.mxu1 %v2969_v1  ;;  %v2534_v1 = vld [vmem:[%s2758_s30 + $0x30] sm:$0xf0]  ;;  %1585 = vmatpush.bf16.msra.mxu3 %v2451_v43 }
  0x80   : > { %v2536_v40 = vor.u32 %v2535_v39, %v2534_v1  ;;  %v2621_v1 = vor.u32 %v2620_v34, %v2888_v11 }
  0x81   : > { %1206 = vmatmul.bf16.gmra.mxu3 %v2764_v7  ;;  %v2443_v7 = vld [vmem:[%s3415_s1 + $0x198] sm:$0xff] }
  0x82   : > { %1536 = vmatpush.bf16.msra.mxu2 %v2443_v7  ;;  %v634_v42 = vrot.slane %v2536_v40, 1  ;;  %v2456_v40 = vld [vmem:[%s3415_s1 + $0x200] sm:$0xff]  ;;  %v643_v41 = vrot.slane %v2621_v1, 1 }
  0x83   : > { %1586 = vmatpush.bf16.msra.mxu3 %v2450_v21  ;;  %1637 = vmatpush.bf16.msra.mxu0 %v2456_v40 }
  0x84   : > { %v3092_v49 = vsel %vm621_vm1, %v634_v42, %v635_v45  ;;  %v644_v42 = vrot.slane %v2926_v33, 1  ;;  %v2540_v33 = vld [vmem:[%s2758_s30 + $0x60] sm:$0xf0] }
  0x86   : > { %1537 = vmatpush.bf16.msra.mxu2 %v2442_v54  ;;  %v3169_v55 = vsel %vm621_vm1, %v643_v41, %v644_v42 }
  0x87   : > { %1587 = vmatpush.bf16.msra.mxu3 %v2449_v22  ;;  %v2542_v22 = vor.u32 %v2541_v57, %v2540_v33 }
  0x89   : > { %v646_v8 = vrot.slane %v2542_v22, 1 }
  0x8a   : > { %1538 = vmatpush.bf16.msra.mxu2 %v2441_v10 }
  0x8b   : > { %1588 = vmatpush.bf16.msra.mxu3 %v2448_v37 }
  0x8e   : > { %1018 = vmatmul.bf16.gmra.mxu2 %v3042_v17  ;;  %1260 = vmatmul.bf16.gmra.mxu0 %v2902_v23 }
  0x8f   : > { %1309 = vmatmul.bf16.gmra.mxu1 %v3060_v36  ;;  %1539 = vmatpush.bf16.msra.mxu2 %v2440_v53  ;;  %v2471_v53 = vld [vmem:[%s3417_s3 + $0x38] sm:$0xff] }
  0x90   : > { %1807 = vmatpush.bf16.msra.mxu1 %v2471_v53 }
  0x91   : > { %1211 = vmatmul.bf16.gmra.mxu3 %v2832_v46 }
  0x9e   : > { %1023 = vmatmul.bf16.gmra.mxu2 %v3092_v49  ;;  %1265 = vmatmul.bf16.gmra.mxu0 %v2972_v4 }
  0x9f   : > { %1314 = vmatmul.bf16.gmra.mxu1 %v3042_v17 }
  0xa1   : > { %1216 = vmatmul.bf16.gmra.mxu3 %v2873_v2 }
  0xab   : > { %v911_v59 = vpop.f32.mrf.mxu0 }
  0xac   : > { %v960_v61 = vpop.f32.mrf.mxu1 }
  0xad   : > { %v3113_v62 = vadd.f32 %v960_v61, %v911_v59 }
  0xae   : > { %1028 = vmatmul.bf16.gmra.mxu2 %v3111_v60  ;;  %1270 = vmatmul.bf16.gmra.mxu0 %v3017_v47 }
  0xaf   : > { %1319 = vmatmul.bf16.gmra.mxu1 %v3092_v49 }
  0xb1   : > { %1221 = vmatmul.bf16.gmra.mxu3 %v2978_v12  ;;  %v931_v0 = vpop.f32.mrf.mxu2 }
  0xb3   : > { %v3129_v14 = vpop.f32.mrf.mxu0 }
  0xb4   : > { %v980_v20 = vpop.f32.mrf.mxu3  ;;  %v3131_v18 = vpop.f32.mrf.mxu1 }
  0xb5   : > { %v3127_v13 = vadd.f32 %v980_v20, %v931_v0  ;;  %v647_v0 = vrot.slane %v2999_v25, 1 }
  0xb7   : > { %v3189_v27 = vsel %vm621_vm1, %v646_v8, %v647_v0 }
  0xb9   : > { %v933_v3 = vpop.f32.mrf.mxu2 }
  0xbb   : > { %v916_v29 = vpop.f32.mrf.mxu0 }
  0xbc   : > { %v982_v32 = vpop.f32.mrf.mxu3  ;;  %v965_v31 = vpop.f32.mrf.mxu1 }
  0xbd   : > { %v3137_v28 = vadd.f32 %v982_v32, %v933_v3  ;;  %v3143_v35 = vadd.f32 %v965_v31, %v916_v29 }
  0xbe   : > { %1033 = vmatmul.bf16.gmra.mxu2 %v3140_v30  ;;  %1275 = vmatmul.bf16.gmra.mxu0 %v2826_v44 }
  0xbf   : > { %1324 = vmatmul.bf16.gmra.mxu1 %v3111_v60 }
  0xc1   : > { %1226 = vmatmul.bf16.gmra.mxu3 %v2770_v9  ;;  %v936_v51 = vpop.f32.mrf.mxu2 }
  0xc3   : > { %v3157_v43 = vpop.f32.mrf.mxu0 }
  0xc4   : > { %v985_v38 = vpop.f32.mrf.mxu3  ;;  %v3160_v39 = vpop.f32.mrf.mxu1 }
  0xc5   : > { %v3155_v7 = vadd.f32 %v985_v38, %v936_v51 }
  0xc9   : > { %v938_v45 = vpop.f32.mrf.mxu2 }
  0xcb   : > { %v921_v21 = vpop.f32.mrf.mxu0 }
  0xcc   : > { %v987_v52 = vpop.f32.mrf.mxu3  ;;  %v970_v11 = vpop.f32.mrf.mxu1 }
  0xcd   : > { %v3166_v54 = vadd.f32 %v987_v52, %v938_v45  ;;  %v3171_v56 = vadd.f32 %v970_v11, %v921_v21  ;;  %v2470_v21 = vld [vmem:[%s3417_s3 + $0x30] sm:$0xff] }
  0xce   : > { %1038 = vmatmul.bf16.gmra.mxu2 %v3169_v55  ;;  %1280 = vmatmul.bf16.gmra.mxu0 %v2905_v24 }
  0xcf   : > { %1329 = vmatmul.bf16.gmra.mxu1 %v3140_v30 }
  0xd0   : > { %1808 = vmatpush.bf16.msra.mxu1 %v2470_v21 }
  0xd1   : > { %1231 = vmatmul.bf16.gmra.mxu3 %v2841_v50  ;;  %v941_v58 = vpop.f32.mrf.mxu2 }
  0xd3   : > { %v3181_v10 = vpop.f32.mrf.mxu0 }
  0xd4   : > { %v990_v59 = vpop.f32.mrf.mxu3  ;;  %v3183_v63 = vpop.f32.mrf.mxu1 }
  0xd5   : > { %v3179_v61 = vadd.f32 %v990_v59, %v941_v58 }
  0xd9   : > { %v943_v20 = vpop.f32.mrf.mxu2 }
  0xdb   : > { %v926_v26 = vpop.f32.mrf.mxu0 }
  0xdc   : > { %v992_v16 = vpop.f32.mrf.mxu3  ;;  %v975_v3 = vpop.f32.mrf.mxu1 }
  0xdd   : > { %v3186_v19 = vadd.f32 %v992_v16, %v943_v20  ;;  %v3191_v32 = vadd.f32 %v975_v3, %v926_v26 }
  0xde   : > { %1043 = vmatmul.bf16.gmra.mxu2 %v3189_v27  ;;  %1285 = vmatmul.bf16.gmra.mxu0 %v2975_v5 }
  0xdf   : > { %1334 = vmatmul.bf16.gmra.mxu1 %v3169_v55 }
  0xe1   : > { %1236 = vmatmul.bf16.gmra.mxu3 %v2885_v6  ;;  %v946_v25 = vpop.f32.mrf.mxu2 }
  0xe3   : > { %v3199_v34 = vpop.f32.mrf.mxu0 }
  0xe4   : > { %v995_v29 = vpop.f32.mrf.mxu3 }
  0xe5   : > { %v3197_v31 = vadd.f32 %v995_v29, %v946_v25 }
  0xe9   : > { %v948_v37 = vpop.f32.mrf.mxu2 }
  0xeb   : > { %v1251_v1 = vpop.f32.mrf.mxu0 }
  0xec   : > { %v997_v51 = vpop.f32.mrf.mxu3 }
  0xed   : > { %v3204_v38 = vadd.f32 %v997_v51, %v948_v37 }
  0xee   : > { %1540 = vmatmul.bf16.vlgmr.msra.gmra.mxu2 %v2832_v46  ;;  %1638 = vmatmul.bf16.vlgmr.msra.gmra.mxu0 %v3060_v36  ;;  %v963_v46 = vadd.f32 %v3131_v18, %v3129_v14  ;;  %v2469_v14 = vld [vmem:[%s3417_s3 + $0x28] sm:$0xff] }
  0xef   : > { %1809 = vmatpush.bf16.msra.mxu1 %v2469_v14 }
  0xf1   : > { %1589 = vmatmul.bf16.vlgmr.msra.gmra.mxu3 %v2902_v23  ;;  %v1009_v40 = vpop.f32.mrf.mxu2 }
  0xf2   : > { %v1010_v41 = vadd.f32 %v1009_v40, %v3113_v62 }
  0xf3   : > { %v1253_v45 = vpop.f32.mrf.mxu0 }
  0xf4   : > { %v1202_v42 = vpop.f32.mrf.mxu3 }
  0xf5   : > { %v1203_v52 = vadd.f32 %v1202_v42, %v1010_v41 }
  0xf7   : > { %v3213_v11 = vadd.f32 %v1251_v1, %v1203_v52 }
  0xf9   : > { %v1011_v33 = vpop.f32.mrf.mxu2 }
  0xfa   : > { %v1012_v36 = vadd.f32 %v1011_v33, %v963_v46 }
  0xfb   : > { %v1256_v23 = vpop.f32.mrf.mxu0 }
  0xfc   : > { %v1204_v57 = vpop.f32.mrf.mxu3 }
  0xfd   : > { %v1205_v58 = vadd.f32 %v1204_v57, %v1012_v36 }
  0xfe   : > { %1545 = vmatmul.bf16.gmra.mxu2 %v2873_v2  ;;  %1643 = vmatmul.bf16.gmra.mxu0 %v3042_v17  ;;  %v968_v2 = vadd.f32 %v3160_v39, %v3157_v43  ;;  %v2468_v43 = vld [vmem:[%s3417_s3 + $0x20] sm:$0xff] }
  0xff   : > { %v3219_v62 = vadd.f32 %v1253_v45, %v1205_v58  ;;  %1810 = vmatpush.bf16.msra.mxu1 %v2468_v43 }
 0x101   : > { %1594 = vmatmul.bf16.gmra.mxu3 %v2972_v4  ;;  %v1014_v59 = vpop.f32.mrf.mxu2 }
 0x102   : > { %v1015_v22 = vadd.f32 %v1014_v59, %v3143_v35 }
 0x103   : > { %v1258_v0 = vpop.f32.mrf.mxu0 }
 0x104   : > { %v1207_v8 = vpop.f32.mrf.mxu3 }
 0x105   : > { %v1208_v20 = vadd.f32 %v1207_v8, %v1015_v22 }
 0x107   : > { %v3226_v18 = vadd.f32 %v1256_v23, %v1208_v20 }
 0x109   : > { %v1016_v17 = vpop.f32.mrf.mxu2 }
 0x10a   : > { %v1017_v16 = vadd.f32 %v1016_v17, %v968_v2 }
 0x10b   : > { %v1261_v4 = vpop.f32.mrf.mxu0 }
 0x10c   : > { %v1209_v26 = vpop.f32.mrf.mxu3 }
 0x10d   : > { %v1210_v3 = vadd.f32 %v1209_v26, %v1017_v16 }
 0x10e   : > { %1550 = vmatmul.bf16.gmra.mxu2 %v2978_v12  ;;  %1648 = vmatmul.bf16.gmra.mxu0 %v3092_v49  ;;  %v973_v12 = vadd.f32 %v3183_v63, %v3181_v10  ;;  %v2467_v10 = vld [vmem:[%s3417_s3 + $0x18] sm:$0xff]  ;;  %v977_v63 = vpop.f32.mrf.mxu1 }
 0x10f   : > { %v3232_v35 = vadd.f32 %v1258_v0, %v1210_v3  ;;  %1811 = vmatpush.bf16.msra.mxu1 %v2467_v10 }
 0x111   : > { %1599 = vmatmul.bf16.gmra.mxu3 %v3017_v47  ;;  %v1019_v25 = vpop.f32.mrf.mxu2 }
 0x112   : > { %v1020_v29 = vadd.f32 %v1019_v25, %v3171_v56  ;;  %v348_v25 = vld [vmem:[%s2758_s30 + $0x6c] sm:$0xff]  }
 0x113   : > { %v1263_v37 = vpop.f32.mrf.mxu0 }
 0x114   : > { %v1212_v53 = vpop.f32.mrf.mxu3 }
 0x115   : > { %v1213_v51 = vadd.f32 %v1212_v53, %v1020_v29  ;;  %v2622_v29 = vld [vmem:[%s2758_s30 + $0x6c] sm:$0xf0]  ;;  %v359_v53 = vld [vmem:[%s2758_s30 + $0x74] sm:$0x1] }
 0x116   : > { %v449_v43 = vunpack.c.l.b16 %v359_v53 }
 0x117   : > { %v3239_v39 = vadd.f32 %v1261_v4, %v1213_v51 }
 0x119   : > { %v1021_v49 = vpop.f32.mrf.mxu2 }
 0x11a   : > { %v1022_v1 = vadd.f32 %v1021_v49, %v973_v12  ;;  %v2623_v12 = vld [vmem:[%s2758_s30 + $0x6c] sm:$0xe] }
 0x11b   : > { %v1266_v47 = vpop.f32.mrf.mxu0 }
 0x11c   : > { %v1214_v40 = vpop.f32.mrf.mxu3 }
 0x11d   : > { %v1215_v41 = vadd.f32 %v1214_v40, %v1022_v1  ;;  %v572_v1 = vshll.u32 %v348_v25, 16  ;;  %v459_v40 = vpack.c.b16 %v449_v43, %v449_v43 }
 0x11e   : > { %1555 = vmatmul.bf16.gmra.mxu2 %v2770_v9  ;;  %1653 = vmatmul.bf16.gmra.mxu0 %v3111_v60  ;;  %v978_v9 = vadd.f32 %v977_v63, %v3199_v34  ;;  %v2466_v34 = vld [vmem:[%s3417_s3 + $0x10] sm:$0xff] }
 0x11f   : > { %v3245_v56 = vadd.f32 %v1263_v37, %v1215_v41  ;;  %1812 = vmatpush.bf16.msra.mxu1 %v2466_v34  ;;  %v574_v10 = vrot.slane %v572_v1, 1  ;;  %v577_v63 = vshll.u32 %v459_v40, 16 }
 0x121   : > { %1604 = vmatmul.bf16.gmra.mxu3 %v2826_v44  ;;  %v1024_v42 = vpop.f32.mrf.mxu2 }
 0x122   : > { %v1025_v45 = vadd.f32 %v1024_v42, %v3191_v32 }
 0x123   : > { %v1268_v21 = vpop.f32.mrf.mxu0 }
 0x124   : > { %v1217_v52 = vpop.f32.mrf.mxu3 }
 0x125   : > { %v1218_v46 = vadd.f32 %v1217_v52, %v1025_v45  ;;  %v2624_v45 = vor.u32 %v2623_v12, %v2622_v29  ;;  %v1300_v52 = vpop.f32.mrf.mxu1 }
 0x127   : > { %v3252_v33 = vadd.f32 %v1266_v47, %v1218_v46  ;;  %v570_v46 = vshrl.u32 %v348_v25, 16 }
 0x129   : > { %v1026_v60 = vpop.f32.mrf.mxu2 }
 0x12a   : > { %v1027_v36 = vadd.f32 %v1026_v60, %v978_v9  ;;  %v650_v9 = vrot.slane %v459_v40, 1  ;;  %v575_v60 = vor.u32 %v574_v10, %v570_v46 }
 0x12b   : > { %v1271_v44 = vpop.f32.mrf.mxu0 }
 0x12c   : > { %v1219_v57 = vpop.f32.mrf.mxu3 }
 0x12d   : > { %v1220_v23 = vadd.f32 %v1219_v57, %v1027_v36  ;;  %v579_v36 = vrot.slane %v577_v63, 1 }
 0x12e   : > { %1560 = vmatmul.bf16.gmra.mxu2 %v2841_v50  ;;  %1658 = vmatmul.bf16.gmra.mxu0 %v3140_v30 }
 0x12f   : > { %v3257_v32 = vadd.f32 %v1268_v21, %v1220_v23 }
 0x131   : > { %1609 = vmatmul.bf16.gmra.mxu3 %v2905_v24  ;;  %v1029_v58 = vpop.f32.mrf.mxu2 }
 0x132   : > { %v1030_v59 = vadd.f32 %v1029_v58, %v3127_v13  ;;  %v2464_v58 = vld [vmem:[%s3417_s3] sm:$0xff] }
 0x133   : > { %v1273_v8 = vpop.f32.mrf.mxu0 }
 0x134   : > { %v1222_v22 = vpop.f32.mrf.mxu3 }
 0x135   : > { %v1223_v0 = vadd.f32 %v1222_v22, %v1030_v59  ;;  %v580_v22 = vsel %vm460_vm0, %v575_v60, %v579_v36 }
 0x137   : > { %v3264_v20 = vadd.f32 %v1271_v44, %v1223_v0 }
 0x139   : > { %v1031_v50 = vpop.f32.mrf.mxu2 }
 0x13a   : > { %v1032_v30 = vadd.f32 %v1031_v50, %v3137_v28  ;;  %v2465_v28 = vld [vmem:[%s3417_s3 + $0x8] sm:$0xff] }
 0x13b   : > { %v1276_v24 = vpop.f32.mrf.mxu0  ;;  %1813 = vmatpush.bf16.msra.mxu1 %v2465_v28 }
 0x13c   : > { %v1224_v14 = vpop.f32.mrf.mxu3 }
 0x13d   : > { %v1225_v2 = vadd.f32 %v1224_v14, %v1032_v30 }
 0x13e   : > { %1565 = vmatmul.bf16.gmra.mxu2 %v2885_v6  ;;  %1663 = vmatmul.bf16.gmra.mxu0 %v3169_v55 }
 0x13f   : > { %v3269_v13 = vadd.f32 %v1273_v8, %v1225_v2  ;;  %1814 = vmatpush.bf16.msra.mxu1 %v2464_v58  ;;  %v1302_v8 = vpop.f32.mrf.mxu1 }
 0x141   : > { %1614 = vmatmul.bf16.gmra.mxu3 %v2975_v5  ;;  %v1034_v17 = vpop.f32.mrf.mxu2 }
 0x142   : > { %v1035_v16 = vadd.f32 %v1034_v17, %v3155_v7 }
 0x143   : > { %v1278_v4 = vpop.f32.mrf.mxu0 }
 0x144   : > { %v1227_v26 = vpop.f32.mrf.mxu3 }
 0x145   : > { %v1228_v3 = vadd.f32 %v1227_v26, %v1035_v16 }
 0x147   : > { %v3278_v6 = vadd.f32 %v1276_v24, %v1228_v3  ;;  %v1305_v2 = vpop.f32.mrf.mxu1 }
 0x148   : > { %v1306_v36 = vadd.f32 %v1305_v2, %v3226_v18 }
 0x149   : > { %v1036_v55 = vpop.f32.mrf.mxu2 }
 0x14a   : > { %v1037_v5 = vadd.f32 %v1036_v55, %v3166_v54 }
 0x14b   : > { %v1281_v51 = vpop.f32.mrf.mxu0 }
 0x14c   : > { %v1229_v37 = vpop.f32.mrf.mxu3 }
 0x14d   : > { %v1230_v7 = vadd.f32 %v1229_v37, %v1037_v5  ;;  %v1301_v37 = vadd.f32 %v1300_v52, %v3213_v11 }
 0x14e   : > { %1570 = vmatmul.bf16.gmra.mxu2 %v2981_v15  ;;  %1668 = vmatmul.bf16.gmra.mxu0 %v3189_v27  ;;  %v649_v27 = vrot.slane %v2624_v45, 1 }
 0x14f   : > { %v3285_v49 = vadd.f32 %v1278_v4, %v1230_v7  ;;  %v1307_v29 = vpop.f32.mrf.mxu1 }
 0x151   : > { %1619 = vmatmul.bf16.gmra.mxu3 %v3020_v48  ;;  %v1039_v47 = vpop.f32.mrf.mxu2 }
 0x152   : > { %v1040_v41 = vadd.f32 %v1039_v47, %v3179_v61  ;;  %v651_v61 = vsel %vm621_vm1, %v649_v27, %v650_v9  ;;  %v1303_v47 = vadd.f32 %v1302_v8, %v3219_v62 }
 0x153   : > { %v1283_v54 = vpop.f32.mrf.mxu0 }
 0x154   : > { %v1232_v42 = vpop.f32.mrf.mxu3 }
 0x155   : > { %v1233_v21 = vadd.f32 %v1232_v42, %v1040_v41 }
 0x157   : > { %v3289_v15 = vadd.f32 %v1281_v51, %v1233_v21  ;;  %v1310_v40 = vpop.f32.mrf.mxu1 }
 0x159   : > { %v1041_v48 = vpop.f32.mrf.mxu2 }
 0x15a   : > { %v1042_v57 = vadd.f32 %v1041_v48, %v3186_v19 }
 0x15b   : > { %v1286_v23 = vpop.f32.mrf.mxu0 }
 0x15c   : > { %v1234_v44 = vpop.f32.mrf.mxu3 }
 0x15d   : > { %v1235_v59 = vadd.f32 %v1234_v44, %v1042_v57 }
 0x15e   : > { %1575 = vmatmul.bf16.gmra.mxu2 %v348_v25  ;;  %1673 = vmatmul.bf16.gmra.mxu0 %v651_v61  ;;  %v1308_v61 = vadd.f32 %v1307_v29, %v3232_v35 }
 0x15f   : > { %v3297_v0 = vadd.f32 %v1283_v54, %v1235_v59  ;;  %v1312_v9 = vpop.f32.mrf.mxu1 }
 0x161   : > { %1624 = vmatmul.bf16.gmra.mxu3 %v580_v22  ;;  %v1044_v34 = vpop.f32.mrf.mxu2 }
 0x162   : > { %v1045_v19 = vadd.f32 %v1044_v34, %v3197_v31 }
 0x163   : > { %v1288_v30 = vpop.f32.mrf.mxu0 }
 0x164   : > { %v1237_v50 = vpop.f32.mrf.mxu3 }
 0x165   : > { %v1238_v14 = vadd.f32 %v1237_v50, %v1045_v19 }
 0x167   : > { %v3300_v24 = vadd.f32 %v1286_v23, %v1238_v14  ;;  %v1315_v8 = vpop.f32.mrf.mxu1 }
 0x169   : > { %v1046_v17 = vpop.f32.mrf.mxu2 }
 0x16a   : > { %v1047_v16 = vadd.f32 %v1046_v17, %v3204_v38  ;;  %v3309_v38 = vld [vmem:[%s3416_s2] ss:$0 sm:$0xff] }
 0x16b   : > { %v1639_v4 = vpop.f32.mrf.mxu0 }
 0x16c   : > { %v1239_v26 = vpop.f32.mrf.mxu3 }
 0x16d   : > { %v1240_v3 = vadd.f32 %v1239_v26, %v1047_v16  ;;  %v1311_v26 = vadd.f32 %v1310_v40, %v3239_v39 }
 0x16f   : > { %v3303_v28 = vadd.f32 %v1288_v30, %v1240_v3  ;;  %v1317_v35 = vpop.f32.mrf.mxu1 }
 0x171   : > { %v1541_v25 = vpop.f32.mrf.mxu2 }
 0x173   : > { %v1641_v5 = vpop.f32.mrf.mxu0 }
 0x174   : > { %v1590_v55 = vpop.f32.mrf.mxu3 }
 0x175   : > { %v1591_v53 = vadd.f32 %v1590_v55, %v1541_v25 }
 0x177   : > { %v1640_v31 = vadd.f32 %v1639_v4, %v1591_v53  ;;  %v1313_v53 = vadd.f32 %v1312_v9, %v3245_v56  ;;  %v1320_v40 = vpop.f32.mrf.mxu1 }
 0x179   : > { %v1543_v51 = vpop.f32.mrf.mxu2  ;;  %v1679_v43 = vadd.f32 %v1640_v31, %v1301_v37 }
 0x17b   : > { %v1644_v1 = vpop.f32.mrf.mxu0  ;;  %v1699_v42 = vadd.f32 %v3309_v38, %v1679_v43 }
 0x17c   : > { %v1592_v7 = vpop.f32.mrf.mxu3 }
 0x17d   : > { %v1593_v12 = vadd.f32 %v1592_v7, %v1543_v51  ;;  %v1715_v21 = vmax.f32 %v1699_v42, 0.0 }
 0x17f   : > { %v1642_v41 = vadd.f32 %v1641_v5, %v1593_v12 }
 0x181   : > { %v1680_v54 = vadd.f32 %v1642_v41, %v1303_v47  ;;  %v1546_v11 = vpop.f32.mrf.mxu2 }
 0x183   : > { %v1700_v45 = vadd.f32 %v3309_v38, %v1680_v54  ;;  %v1646_v63 = vpop.f32.mrf.mxu0  ;;  %v1316_v54 = vadd.f32 %v1315_v8, %v3252_v33 }
 0x184   : > { %v1595_v52 = vpop.f32.mrf.mxu3 }
 0x185   : > { %v1716_v46 = vmax.f32 %v1700_v45, 0.0  ;;  %v1596_v10 = vadd.f32 %v1595_v52, %v1546_v11 }
 0x187   : > { %v1731_v27 = vpack.c.bf16 %v1716_v46, %v1715_v21  ;;  %v1645_v60 = vadd.f32 %v1644_v1, %v1596_v10  ;;  %v1318_v46 = vadd.f32 %v1317_v35, %v3257_v32 }
 0x189   : > { %1815 = vmatmul.bf16.vlgmr.msra.gmra.mxu1 %v1731_v27  ;;  %v1548_v48 = vpop.f32.mrf.mxu2  ;;  %v1681_v57 = vadd.f32 %v1645_v60, %v1306_v36 }
 0x18b   : > { %v1649_v23 = vpop.f32.mrf.mxu0  ;;  %v1701_v22 = vadd.f32 %v3309_v38, %v1681_v57 }
 0x18c   : > { %v1597_v62 = vpop.f32.mrf.mxu3 }
 0x18d   : > { %v1598_v44 = vadd.f32 %v1597_v62, %v1548_v48  ;;  %v1717_v17 = vmax.f32 %v1701_v22, 0.0 }
 0x18f   : > { %v1647_v58 = vadd.f32 %v1646_v63, %v1598_v44  ;;  %v1322_v63 = vpop.f32.mrf.mxu1 }
 0x191   : > { %v1682_v59 = vadd.f32 %v1647_v58, %v1308_v61  ;;  %v1551_v34 = vpop.f32.mrf.mxu2 }
 0x193   : > { %v1702_v19 = vadd.f32 %v3309_v38, %v1682_v59  ;;  %v1651_v14 = vpop.f32.mrf.mxu0  ;;  %v1321_v59 = vadd.f32 %v1320_v40, %v3264_v20 }
 0x194   : > { %v1600_v50 = vpop.f32.mrf.mxu3 }
 0x195   : > { %v1601_v30 = vadd.f32 %v1600_v50, %v1551_v34  ;;  %v1718_v18 = vmax.f32 %v1702_v19, 0.0  ;;  %v1323_v50 = vadd.f32 %v1322_v63, %v3269_v13 }
 0x197   : > { %v1732_v2 = vpack.c.bf16 %v1718_v18, %v1717_v17  ;;  %v1650_v16 = vadd.f32 %v1649_v23, %v1601_v30  ;;  %v1325_v58 = vpop.f32.mrf.mxu1 }
 0x199   : > { %1820 = vmatmul.bf16.gmra.mxu1 %v1732_v2  ;;  %v1553_v4 = vpop.f32.mrf.mxu2  ;;  %v1683_v25 = vadd.f32 %v1650_v16, %v1311_v26 }
 0x19b   : > { %v1654_v55 = vpop.f32.mrf.mxu0  ;;  %v1703_v37 = vadd.f32 %v3309_v38, %v1683_v25 }
 0x19c   : > { %v1602_v3 = vpop.f32.mrf.mxu3 }
 0x19d   : > { %v1603_v29 = vadd.f32 %v1602_v3, %v1553_v4  ;;  %v1719_v47 = vmax.f32 %v1703_v37, 0.0 }
 0x19f   : > { %v1652_v5 = vadd.f32 %v1651_v14, %v1603_v29  ;;  %v1327_v16 = vpop.f32.mrf.mxu1 }
 0x1a1   : > { %v1684_v31 = vadd.f32 %v1652_v5, %v1313_v53  ;;  %v1556_v51 = vpop.f32.mrf.mxu2 }
 0x1a3   : > { %v1704_v7 = vadd.f32 %v3309_v38, %v1684_v31  ;;  %v1656_v1 = vpop.f32.mrf.mxu0 }
 0x1a4   : > { %v1605_v43 = vpop.f32.mrf.mxu3 }
 0x1a5   : > { %v1606_v12 = vadd.f32 %v1605_v43, %v1556_v51  ;;  %v1720_v39 = vmax.f32 %v1704_v7, 0.0  ;;  %v1328_v51 = vadd.f32 %v1327_v16, %v3285_v49 }
 0x1a7   : > { %v1733_v41 = vpack.c.bf16 %v1720_v39, %v1719_v47  ;;  %v1655_v42 = vadd.f32 %v1654_v55, %v1606_v12  ;;  %v1326_v55 = vadd.f32 %v1325_v58, %v3278_v6  ;;  %v1330_v37 = vpop.f32.mrf.mxu1 }
 0x1a9   : > { %1825 = vmatmul.bf16.gmra.mxu1 %v1733_v41  ;;  %v1558_v45 = vpop.f32.mrf.mxu2  ;;  %v1685_v11 = vadd.f32 %v1655_v42, %v1316_v54 }
 0x1ab   : > { %v1659_v21 = vpop.f32.mrf.mxu0  ;;  %v1705_v9 = vadd.f32 %v3309_v38, %v1685_v11 }
 0x1ac   : > { %v1607_v56 = vpop.f32.mrf.mxu3 }
 0x1ad   : > { %v1608_v52 = vadd.f32 %v1607_v56, %v1558_v45  ;;  %v1721_v44 = vmax.f32 %v1705_v9, 0.0 }
 0x1af   : > { %v1657_v10 = vadd.f32 %v1656_v1, %v1608_v52  ;;  %v1332_v45 = vpop.f32.mrf.mxu1  ;;  %v1331_v52 = vadd.f32 %v1330_v37, %v3289_v15 }
 0x1b0   : > { %v1333_v63 = vadd.f32 %v1332_v45, %v3297_v0 }
 0x1b1   : > { %v1686_v27 = vadd.f32 %v1657_v10, %v1318_v46  ;;  %v1561_v60 = vpop.f32.mrf.mxu2 }
 0x1b3   : > { %v1706_v36 = vadd.f32 %v3309_v38, %v1686_v27  ;;  %v1661_v57 = vpop.f32.mrf.mxu0 }
 0x1b4   : > { %v1610_v48 = vpop.f32.mrf.mxu3 }
 0x1b5   : > { %v1611_v62 = vadd.f32 %v1610_v48, %v1561_v60  ;;  %v1722_v33 = vmax.f32 %v1706_v36, 0.0 }
 0x1b7   : > { %v1734_v23 = vpack.c.bf16 %v1722_v33, %v1721_v44  ;;  %v1660_v61 = vadd.f32 %v1659_v21, %v1611_v62  ;;  %v1335_v36 = vpop.f32.mrf.mxu1 }
 0x1b9   : > { %1830 = vmatmul.bf16.gmra.mxu1 %v1734_v23  ;;  %v1563_v32 = vpop.f32.mrf.mxu2  ;;  %v1687_v8 = vadd.f32 %v1660_v61, %v1321_v59  ;;  %v1336_v59 = vadd.f32 %v1335_v36, %v3300_v24 }
 0x1bb   : > { %v1664_v19 = vpop.f32.mrf.mxu0  ;;  %v1707_v17 = vadd.f32 %v3309_v38, %v1687_v8 }
 0x1bc   : > { %v1612_v22 = vpop.f32.mrf.mxu3 }
 0x1bd   : > { %v1613_v34 = vadd.f32 %v1612_v22, %v1563_v32  ;;  %v1723_v35 = vmax.f32 %v1707_v17, 0.0 }
 0x1bf   : > { %v1662_v30 = vadd.f32 %v1661_v57, %v1613_v34  ;;  %v1337_v32 = vpop.f32.mrf.mxu1 }
 0x1c1   : > { %v1688_v14 = vadd.f32 %v1662_v30, %v1323_v50  ;;  %v1566_v18 = vpop.f32.mrf.mxu2  ;;  %v1338_v50 = vadd.f32 %v1337_v32, %v3303_v28  ;;  %v2493_v28 = vld [vmem:[%s3347_s18] sm:$0xff]  }
 0x1c3   : > { %v1708_v2 = vadd.f32 %v3309_v38, %v1688_v14  ;;  %v1666_v20 = vpop.f32.mrf.mxu0 }
 0x1c4   : > { %v1615_v26 = vpop.f32.mrf.mxu3 }
 0x1c5   : > { %v1616_v4 = vadd.f32 %v1615_v26, %v1566_v18  ;;  %v1724_v3 = vmax.f32 %v1708_v2, 0.0  ;;  %v2494_v26 = vunpack.c.l.bf16 %v2493_v28 }
 0x1c7   : > { %v1735_v25 = vpack.c.bf16 %v1724_v3, %v1723_v35  ;;  %v1665_v29 = vadd.f32 %v1664_v19, %v1616_v4 }
 0x1c9   : > { %1835 = vmatmul.bf16.gmra.mxu1 %v1735_v25  ;;  %v1568_v53 = vpop.f32.mrf.mxu2  ;;  %v1689_v5 = vadd.f32 %v1665_v29, %v1326_v55  ;;  %v2495_v25 = vunpack.c.h.bf16 %v2493_v28 }
 0x1cb   : > { %v1669_v43 = vpop.f32.mrf.mxu0  ;;  %v1709_v1 = vadd.f32 %v3309_v38, %v1689_v5 }
 0x1cc   : > { %v1617_v13 = vpop.f32.mrf.mxu3 }
 0x1cd   : > { %v1618_v31 = vadd.f32 %v1617_v13, %v1568_v53  ;;  %v1725_v42 = vmax.f32 %v1709_v1, 0.0  ;;  %v2543_v13 = vld [vmem:[%s3347_s18 + $0x8] sm:$0xff]  }
 0x1cf   : > { %v1667_v7 = vadd.f32 %v1666_v20, %v1618_v31  ;;  %v2498_v31 = vunpack.c.l.bf16 %v2543_v13 }
 0x1d1   : > { %v1690_v12 = vadd.f32 %v1667_v7, %v1328_v51  ;;  %v1571_v47 = vpop.f32.mrf.mxu2 }
 0x1d3   : > { %v1710_v39 = vadd.f32 %v3309_v38, %v1690_v12  ;;  %v1671_v11 = vpop.f32.mrf.mxu0  ;;  %v2499_v12 = vunpack.c.h.bf16 %v2543_v13 }
 0x1d4   : > { %v1620_v40 = vpop.f32.mrf.mxu3 }
 0x1d5   : > { %v1621_v41 = vadd.f32 %v1620_v40, %v1571_v47  ;;  %v1726_v54 = vmax.f32 %v1710_v39, 0.0  ;;  %v2544_v40 = vld [vmem:[%s3347_s18 + $0x10] sm:$0xff]  }
 0x1d7   : > { %v1736_v6 = vpack.c.bf16 %v1726_v54, %v1725_v42  ;;  %v1670_v56 = vadd.f32 %v1669_v43, %v1621_v41  ;;  %v2502_v42 = vunpack.c.l.bf16 %v2544_v40 }
 0x1d9   : > { %1840 = vmatmul.bf16.gmra.mxu1 %v1736_v6  ;;  %v1573_v49 = vpop.f32.mrf.mxu2  ;;  %v1691_v46 = vadd.f32 %v1670_v56, %v1331_v52 }
 0x1db   : > { %v1711_v60 = vadd.f32 %v3309_v38, %v1691_v46  ;;  %v1674_v57 = vpop.f32.mrf.mxu0  ;;  %v2545_v46 = vld [vmem:[%s3347_s18 + $0x18] sm:$0xff]  }
 0x1dc   : > { %v1622_v21 = vpop.f32.mrf.mxu3 }
 0x1dd   : > { %v1623_v10 = vadd.f32 %v1622_v21, %v1573_v49  ;;  %v1727_v23 = vmax.f32 %v1711_v60, 0.0 }
 0x1df   : > { %v1672_v27 = vadd.f32 %v1671_v11, %v1623_v10  ;;  %v2503_v11 = vunpack.c.h.bf16 %v2544_v40 }
 0x1e1   : > { %v1692_v9 = vadd.f32 %v1672_v27, %v1333_v63  ;;  %v1576_v48 = vpop.f32.mrf.mxu2  ;;  %v2506_v63 = vunpack.c.l.bf16 %v2545_v46 }
 0x1e3   : > { %v1712_v62 = vadd.f32 %v3309_v38, %v1692_v9  ;;  %v1676_v19 = vpop.f32.mrf.mxu0 }
 0x1e4   : > { %v1625_v44 = vpop.f32.mrf.mxu3 }
 0x1e5   : > { %v1626_v33 = vadd.f32 %v1625_v44, %v1576_v48  ;;  %v1728_v15 = vmax.f32 %v1712_v62, 0.0  ;;  %v2507_v48 = vunpack.c.h.bf16 %v2545_v46 }
 0x1e7   : > { %v1737_v61 = vpack.c.bf16 %v1728_v15, %v1727_v23  ;;  %v1675_v58 = vadd.f32 %v1674_v57, %v1626_v33  ;;  %v2546_v33 = vld [vmem:[%s3347_s18 + $0x20] sm:$0xff]  }
 0x1e8   : > { %v2510_v15 = vunpack.c.l.bf16 %v2546_v33  ;;  %v2511_v32 = vunpack.c.h.bf16 %v2546_v33 }
 0x1e9   : > { %1845 = vmatmul.bf16.gmra.mxu1 %v1737_v61  ;;  %v1578_v0 = vpop.f32.mrf.mxu2  ;;  %v1693_v8 = vadd.f32 %v1675_v58, %v1336_v59 }
 0x1eb   : > { %v1713_v17 = vadd.f32 %v3309_v38, %v1693_v8 }
 0x1ec   : > { %v1627_v22 = vpop.f32.mrf.mxu3 }
 0x1ed   : > { %v1628_v34 = vadd.f32 %v1627_v22, %v1578_v0  ;;  %v1729_v2 = vmax.f32 %v1713_v17, 0.0 }
 0x1ef   : > { %v1677_v30 = vadd.f32 %v1676_v19, %v1628_v34  ;;  %v2547_v19 = vld [vmem:[%s3347_s18 + $0x28] sm:$0xff]  }
 0x1f1   : > { %v1694_v14 = vadd.f32 %v1677_v30, %v1338_v50  ;;  %v2514_v30 = vunpack.c.l.bf16 %v2547_v19 }
 0x1f3   : > { %v1714_v18 = vadd.f32 %v3309_v38, %v1694_v14  ;;  %v3353_v38 = vld [vmem:[%s3418_s4] ss:$0 sm:$0xff] }
 0x1f5   : > { %v1730_v24 = vmax.f32 %v1714_v18, 0.0 }
 0x1f7   : > { %v1738_v16 = vpack.c.bf16 %v1730_v24, %v1729_v2  ;;  %v2515_v24 = vunpack.c.h.bf16 %v2547_v19 }
 0x1f9   : > { %1850 = vmatmul.bf16.gmra.mxu1 %v1738_v16 }
 0x206   : > { %v1816_v4 = vpop.f32.mrf.mxu1 }
 0x207   : > { %v1817_v35 = vadd.f32 %v3353_v38, %v1816_v4  ;;  %v2548_v4 = vld [vmem:[%s3347_s18 + $0x30] sm:$0xff]  }
 0x209   : > { %v1888_v3 = vadd.f32 %v2494_v26, %v1817_v35 }
 0x20b   : > { %v1904_v20 = vmax.f32 %v1888_v3, 0.0  ;;  %v2518_v3 = vunpack.c.l.bf16 %v2548_v4 }
 0x20d   : > { %1920 = vst [vmem:[%s3359_s7] sm:$0xff] %v1904_v20 }
 0x20e   : > { %v1818_v29 = vpop.f32.mrf.mxu1 }
 0x20f   : > { %v1819_v55 = vadd.f32 %v3353_v38, %v1818_v29 }
 0x211   : > { %v1889_v53 = vadd.f32 %v2495_v25, %v1819_v55 }
 0x213   : > { %v1905_v5 = vmax.f32 %v1889_v53, 0.0  ;;  %v2519_v53 = vunpack.c.h.bf16 %v2548_v4 }
 0x215   : > { %1921 = vst [vmem:[%s3359_s7 + $0x8] sm:$0xff] %v1905_v5 }
 0x216   : > { %v1821_v37 = vpop.f32.mrf.mxu1 }
 0x217   : > { %v1822_v51 = vadd.f32 %v3353_v38, %v1821_v37  ;;  %v2549_v37 = vld [vmem:[%s3347_s18 + $0x38] sm:$0xff]  }
 0x219   : > { %v1890_v7 = vadd.f32 %v2498_v31, %v1822_v51 }
 0x21b   : > { %v1906_v43 = vmax.f32 %v1890_v7, 0.0  ;;  %v2522_v7 = vunpack.c.l.bf16 %v2549_v37 }
 0x21d   : > { %1922 = vst [vmem:[%s3359_s7 + $0x10] sm:$0xff] %v1906_v43 }
 0x21e   : > { %v1823_v1 = vpop.f32.mrf.mxu1 }
 0x21f   : > { %v1824_v47 = vadd.f32 %v3353_v38, %v1823_v1 }
 0x221   : > { %v1891_v39 = vadd.f32 %v2499_v12, %v1824_v47 }
 0x223   : > { %v1907_v41 = vmax.f32 %v1891_v39, 0.0  ;;  %v2523_v39 = vunpack.c.h.bf16 %v2549_v37 }
 0x225   : > { %1923 = vst [vmem:[%s3359_s7 + $0x18] sm:$0xff] %v1907_v41 }
 0x226   : > { %v1826_v54 = vpop.f32.mrf.mxu1 }
 0x227   : > { %v1827_v6 = vadd.f32 %v3353_v38, %v1826_v54 }
 0x229   : > { %v1892_v45 = vadd.f32 %v2502_v42, %v1827_v6 }
 0x22b   : > { %v1908_v56 = vmax.f32 %v1892_v45, 0.0 }
 0x22d   : > { %1924 = vst [vmem:[%s3359_s7 + $0x20] sm:$0xff] %v1908_v56 }
 0x22e   : > { %v1828_v52 = vpop.f32.mrf.mxu1 }
 0x22f   : > { %v1829_v49 = vadd.f32 %v3353_v38, %v1828_v52 }
 0x231   : > { %v1893_v21 = vadd.f32 %v2503_v11, %v1829_v49 }
 0x233   : > { %v1909_v10 = vmax.f32 %v1893_v21, 0.0 }
 0x235   : > { %1925 = vst [vmem:[%s3359_s7 + $0x28] sm:$0xff] %v1909_v10 }
 0x236   : > { %v1831_v27 = vpop.f32.mrf.mxu1 }
 0x237   : > { %v1832_v9 = vadd.f32 %v3353_v38, %v1831_v27 }
 0x239   : > { %v1894_v60 = vadd.f32 %v2506_v63, %v1832_v9 }
 0x23b   : > { %v1910_v36 = vmax.f32 %v1894_v60, 0.0 }
 0x23d   : > { %1926 = vst [vmem:[%s3359_s7 + $0x30] sm:$0xff] %v1910_v36 }
 0x23e   : > { %v1833_v62 = vpop.f32.mrf.mxu1 }
 0x23f   : > { %v1834_v57 = vadd.f32 %v3353_v38, %v1833_v62 }
 0x241   : > { %v1895_v44 = vadd.f32 %v2507_v48, %v1834_v57 }
 0x243   : > { %v1911_v23 = vmax.f32 %v1895_v44, 0.0 }
 0x245   : > { %1927 = vst [vmem:[%s3359_s7 + $0x38] sm:$0xff] %v1911_v23 }
 0x246   : > { %v1836_v61 = vpop.f32.mrf.mxu1 }
 0x247   : > { %v1837_v58 = vadd.f32 %v3353_v38, %v1836_v61 }
 0x249   : > { %v1896_v59 = vadd.f32 %v2510_v15, %v1837_v58 }
 0x24b   : > { %v1912_v0 = vmax.f32 %v1896_v59, 0.0 }
 0x24d   : > { %1928 = vst [vmem:[%s3359_s7 + $0x40] sm:$0xff] %v1912_v0 }
 0x24e   : > { %v1838_v22 = vpop.f32.mrf.mxu1 }
 0x24f   : > { %v1839_v8 = vadd.f32 %v3353_v38, %v1838_v22 }
 0x251   : > { %v1897_v34 = vadd.f32 %v2511_v32, %v1839_v8 }
 0x253   : > { %v1913_v50 = vmax.f32 %v1897_v34, 0.0 }
 0x255   : > { %1929 = vst [vmem:[%s3359_s7 + $0x48] sm:$0xff] %v1913_v50 }
 0x256   : > { %v1841_v14 = vpop.f32.mrf.mxu1 }
 0x257   : > { %v1842_v17 = vadd.f32 %v3353_v38, %v1841_v14 }
 0x259   : > { %v1898_v18 = vadd.f32 %v2514_v30, %v1842_v17 }
 0x25b   : > { %v1914_v2 = vmax.f32 %v1898_v18, 0.0 }
 0x25d   : > { %1930 = vst [vmem:[%s3359_s7 + $0x50] sm:$0xff] %v1914_v2 }
 0x25e   : > { %v1843_v16 = vpop.f32.mrf.mxu1 }
 0x25f   : > { %v1844_v28 = vadd.f32 %v3353_v38, %v1843_v16 }
 0x261   : > { %v1899_v26 = vadd.f32 %v2515_v24, %v1844_v28 }
 0x263   : > { %v1915_v35 = vmax.f32 %v1899_v26, 0.0 }
 0x265   : > { %1931 = vst [vmem:[%s3359_s7 + $0x58] sm:$0xff] %v1915_v35 }
 0x266   : > { %v1846_v20 = vpop.f32.mrf.mxu1 }
 0x267   : > { %v1847_v25 = vadd.f32 %v3353_v38, %v1846_v20 }
 0x269   : > { %v1900_v29 = vadd.f32 %v2518_v3, %v1847_v25 }
 0x26b   : > { %v1916_v55 = vmax.f32 %v1900_v29, 0.0 }
 0x26d   : > { %1932 = vst [vmem:[%s3359_s7 + $0x60] sm:$0xff] %v1916_v55 }
 0x26e   : > { %v1848_v13 = vpop.f32.mrf.mxu1 }
 0x26f   : > { %v1849_v5 = vadd.f32 %v3353_v38, %v1848_v13 }
 0x271   : > { %v1901_v31 = vadd.f32 %v2519_v53, %v1849_v5 }
 0x273   : > { %v1917_v51 = vmax.f32 %v1901_v31, 0.0 }
 0x275   : > { %1933 = vst [vmem:[%s3359_s7 + $0x68] sm:$0xff] %v1917_v51 }
 0x276   : > { %v1851_v43 = vpop.f32.mrf.mxu1 }
 0x277   : > { %v1852_v12 = vadd.f32 %v3353_v38, %v1851_v43 }
 0x279   : > { %v1902_v1 = vadd.f32 %v2522_v7, %v1852_v12 }
 0x27b   : > { %v1918_v47 = vmax.f32 %v1902_v1, 0.0 }
 0x27d   : > { %1934 = vst [vmem:[%s3359_s7 + $0x70] sm:$0xff] %v1918_v47 }
 0x27e   : > { %v1853_v40 = vpop.f32.mrf.mxu1 }
 0x27f   : > { %v1854_v41 = vadd.f32 %v3353_v38, %v1853_v40 }
 0x281   : > { %v1903_v42 = vadd.f32 %v2523_v39, %v1854_v41 }
 0x283   : > { %v1919_v54 = vmax.f32 %v1903_v42, 0.0 }
 0x285   : > { %1935 = vst [vmem:[%s3359_s7 + $0x78] sm:$0xff] %v1919_v54 }
 0x286 PF: > { %s16_s25 = sadd.s32 1, %s2663_s25   ;;  %s3421_s21 = smov %s2655_s23 }
 0x287   : > { %p13_p8 = scmp.ge.s32.totalorder %s16_s25, 6   ;;  %s3422_s22 = smov %s2659_s24 }
 0x288   : > { %s3423_s23 = smov %s3426_s26  ;;  %s3424_s24 = smov %s3430_s27 }
 0x289   :  { %15 = sbr.rel (!%p13_p8) target bundleno = 3 (0x3), region = 77 }

</bundles_post_ra>
